<compile_context>
chip_gen: v6e
topology: v6e:2x2x1
jax: 0.10.0
libtpu: 0.0.40
codegen_flags: <defaults>
</compile_context>

<pallas_src>
import functools

import jax
import jax.numpy as jnp
from jax import lax
from jax.experimental import pallas as pl
from jax.experimental.pallas import tpu as pltpu

LANES = 128      # lane width of a vreg (last-dim padding target)
SUBLANES = 8     # sublane count (batch padding target)


# -----------------------------------------------------------------------------
# Fused Pallas kernel
# -----------------------------------------------------------------------------
def _fused_elman_kernel(*refs, num_layers, seq_len, b_pad, lanes):
    n_in = 6 + 4 * num_layers
    x_ref, w_init_ref, b_init_ref = refs[:3]
    layer_refs = refs[3:3 + 4 * num_layers]
    w_out_f_ref, w_out_b_ref, b_out_ref = refs[3 + 4 * num_layers:n_in]
    o_ref = refs[n_in]
    nat_a, rev_a, nat_b, rev_b, pre = refs[n_in + 1:n_in + 6]

    # --- Stage 1: init Linear + ReLU over all T*B_pad rows in one matmul, ---
    # --- plus a time-reversed copy (feeds the bwd-direction projections). ---
    act = jnp.maximum(
        jnp.dot(x_ref[...], w_init_ref[...],
                preferred_element_type=jnp.float32) + b_init_ref[...],
        0.0)
    nat_a[...] = act
    for t in range(seq_len):                       # outside the serial chain
        src = (seq_len - 1 - t) * b_pad
        rev_a[pl.ds(src, b_pad), :] = act[t * b_pad:(t + 1) * b_pad, :]

    # Ping-pong buffer sets: (natural-order, time-reversed) per layer.
    sets = ((nat_a, rev_a), (nat_b, rev_b))

    for layer in range(num_layers):
        in_nat, in_rev = sets[layer % 2]
        out_nat, out_rev = sets[(layer + 1) % 2]
        a_ref = layer_refs[4 * layer]          # W_ih rows feeding natural buf
        b_w_ref = layer_refs[4 * layer + 1]    # W_ih rows feeding reversed buf
        bias_ref = layer_refs[4 * layer + 2]
        whh_ref = layer_refs[4 * layer + 3]
        last_layer = layer == num_layers - 1

        # Hoisted, direction-merged input projection (off the recurrence):
        # row-block i of `pre` = [fwd pre-act of time i | bwd pre-act of time
        # T-1-i], so the serial step is just load + dot + tanh.
        pre[...] = (
            jnp.dot(in_nat[...], a_ref[...], preferred_element_type=jnp.float32)
            + jnp.dot(in_rev[...], b_w_ref[...],
                      preferred_element_type=jnp.float32)
            + bias_ref[...])

        whh = whh_ref[...]   # block-diagonal (fwd | bwd) recurrent weights

        def step(i, h, pre=pre, out_nat=out_nat, out_rev=out_rev, whh=whh,
                 last_layer=last_layer):
            ri = pl.multiple_of(i * b_pad, b_pad)
            h_new = jnp.tanh(
                pre[pl.ds(ri, b_pad), :]
                + jnp.dot(h, whh, preferred_element_type=jnp.float32))
            # Unmasked full-width stores; lanes >= 2H are exact zeros already.
            out_nat[pl.ds(ri, b_pad), :] = h_new
            if not last_layer:
                rj = pl.multiple_of((seq_len - 1 - i) * b_pad, b_pad)
                out_rev[pl.ds(rj, b_pad), :] = h_new
            return h_new

        h0 = jnp.zeros((b_pad, lanes), jnp.float32)
        lax.fori_loop(0, seq_len, step, h0, unroll=True)

    # --- Stage 3: final Linear on [h_fwd(T-1) | h_bwd(T-1)]. ---------------
    # h_fwd(T-1) lives in lanes 0:H of the last step's tile (block T-1);
    # h_bwd(T-1) lives in lanes H:2H of the first step's tile (block 0).
    # The concat is folded into two row-masked output weight tiles.
    final_nat = sets[num_layers % 2][0]
    h_last = final_nat[pl.ds((seq_len - 1) * b_pad, b_pad), :]
    h_first = final_nat[pl.ds(0, b_pad), :]
    o_ref[...] = (
        jnp.dot(h_last, w_out_f_ref[...], preferred_element_type=jnp.float32)
        + jnp.dot(h_first, w_out_b_ref[...], preferred_element_type=jnp.float32)
        + b_out_ref[...])


# -----------------------------------------------------------------------------
# One-time weight packing (hoisted out of the per-call path)
# -----------------------------------------------------------------------------
def pack_params(params, *, num_layers, hidden_dim, input_dim, output_dim):
    """Pack weights into 128x128 lane-padded tiles ONCE (not per forward)."""
    H = hidden_dim

    w_init = (jnp.zeros((LANES, LANES), jnp.float32)
              .at[:input_dim, :input_dim].set(params["init_w"]))
    b_init = (jnp.zeros((1, LANES), jnp.float32)
              .at[:, :input_dim].set(params["init_b"]))
    packed = [w_init, b_init]

    for l in range(num_layers):
        w_ih_f, w_hh_f, b_f = params[f"rnn_l{l}_fwd"]
        w_ih_b, w_hh_b, b_b = params[f"rnn_l{l}_bwd"]
        A = jnp.zeros((LANES, LANES), jnp.float32)    # multiplies natural buf
        Bm = jnp.zeros((LANES, LANES), jnp.float32)   # multiplies reversed buf
        if l == 0:
            # Layer-0 input is the (Din-wide) init activation in lanes 0:Din.
            A = A.at[:input_dim, :H].set(w_ih_f)
            Bm = Bm.at[:input_dim, H:2 * H].set(w_ih_b)
        else:
            # Natural buf block i  = [fwd(i)        | bwd(T-1-i)]
            # Reversed buf block i = [fwd(T-1-i)    | bwd(i)     ]
            A = (A.at[:H, :H].set(w_ih_f[:H])
                 .at[H:2 * H, H:2 * H].set(w_ih_b[H:2 * H]))
            Bm = (Bm.at[H:2 * H, :H].set(w_ih_f[H:2 * H])
                  .at[:H, H:2 * H].set(w_ih_b[:H]))
        bias = (jnp.zeros((1, LANES), jnp.float32)
                .at[:, :H].set(b_f).at[:, H:2 * H].set(b_b))
        whh = (jnp.zeros((LANES, LANES), jnp.float32)      # block-diagonal
               .at[:H, :H].set(w_hh_f)
               .at[H:2 * H, H:2 * H].set(w_hh_b))
        packed += [A, Bm, bias, whh]

    w_out_f = (jnp.zeros((LANES, LANES), jnp.float32)
               .at[:H, :output_dim].set(params["out_w"][:H]))
    w_out_b = (jnp.zeros((LANES, LANES), jnp.float32)
               .at[H:2 * H, :output_dim].set(params["out_w"][H:2 * H]))
    b_out = (jnp.zeros((1, LANES), jnp.float32)
             .at[:, :output_dim].set(params["out_b"]))
    packed += [w_out_f, w_out_b, b_out]
    return tuple(jax.device_put(p) for p in packed)


# -----------------------------------------------------------------------------
# Forward wrapper: minimal per-call work (input pad) + single pallas_call
# -----------------------------------------------------------------------------
@functools.partial(jax.jit,
                   static_argnames=("num_layers", "hidden_dim", "output_dim"))
def elman_rnn_forward(packed, x_btd, *, num_layers, hidden_dim, output_dim):
    B, T, Din = x_btd.shape
    H = hidden_dim
    assert Din <= LANES and 2 * H <= LANES and output_dim <= LANES
    B_pad = ((B + SUBLANES - 1) // SUBLANES) * SUBLANES

    # Single fused transpose+pad+reshape: time-major (T*B_pad, 128) input.
    x_flat = jnp.pad(
        jnp.transpose(x_btd.astype(jnp.float32), (1, 0, 2)),
        ((0, 0), (0, B_pad - B), (0, LANES - Din))).reshape(T * B_pad, LANES)

    args = (x_flat,) + tuple(packed)
    n_in = len(args)
    assert n_in == 6 + 4 * num_layers

    # VMEM footprint guard: resident inputs + output + 5 scratch buffers must
    # stay well under the default scoped limit (16 MiB on v5e).
    footprint = (sum(int(a.size) * 4 for a in args)
                 + B_pad * LANES * 4
                 + 5 * T * B_pad * LANES * 4)
    assert footprint < 16 * 1024 * 1024, "VMEM footprint too large"

    kernel = functools.partial(
        _fused_elman_kernel, num_layers=num_layers, seq_len=T,
        b_pad=B_pad, lanes=LANES)

    out = pl.pallas_call(
        kernel,
        out_shape=jax.ShapeDtypeStruct((B_pad, LANES), jnp.float32),
        in_specs=[pl.BlockSpec(memory_space=pltpu.MemorySpace.VMEM)] * n_in,
        out_specs=pl.BlockSpec(memory_space=pltpu.MemorySpace.VMEM),
        scratch_shapes=[
            pltpu.VMEM((T * B_pad, LANES), jnp.float32),   # nat_a
            pltpu.VMEM((T * B_pad, LANES), jnp.float32),   # rev_a
            pltpu.VMEM((T * B_pad, LANES), jnp.float32),   # nat_b
            pltpu.VMEM((T * B_pad, LANES), jnp.float32),   # rev_b
            pltpu.VMEM((T * B_pad, LANES), jnp.float32),   # pre (projections)
        ],
    )(*args)

    return out[:B, :output_dim]


# -----------------------------------------------------------------------------
# Parameter init (matches PyTorch default U(-1/sqrt(fan), +1/sqrt(fan)))
# -----------------------------------------------------------------------------
def init_params(key, input_dim, hidden_dim, output_dim, num_layers):
    params = {}

    def uniform(k, shape, bound):
        return jax.random.uniform(k, shape, jnp.float32, -bound, bound)

    keys = jax.random.split(key, 4 + num_layers * 2 * 4)
    ki = iter(keys)

    # init_linear: Linear(input_dim -> input_dim)
    kb = 1.0 / jnp.sqrt(input_dim)
    params["init_w"] = uniform(next(ki), (input_dim, input_dim), kb)   # (in, out)
    params["init_b"] = uniform(next(ki), (1, input_dim), kb)

    # bidirectional, num_layers Elman RNN with tanh
    kh = 1.0 / jnp.sqrt(hidden_dim)
    for l in range(num_layers):
        in_size = input_dim if l == 0 else 2 * hidden_dim
        for dname in ("fwd", "bwd"):
            w_ih = uniform(next(ki), (in_size, hidden_dim), kh)        # (in, out)
            w_hh = uniform(next(ki), (hidden_dim, hidden_dim), kh)
            b_ih = uniform(next(ki), (1, hidden_dim), kh)
            b_hh = uniform(next(ki), (1, hidden_dim), kh)
            params[f"rnn_l{l}_{dname}"] = (w_ih, w_hh, b_ih + b_hh)

    # final linear: Linear(2*hidden_dim -> output_dim)
    ko = 1.0 / jnp.sqrt(2 * hidden_dim)
    params["out_w"] = uniform(next(ki), (2 * hidden_dim, output_dim), ko)
    params["out_b"] = uniform(next(ki), (1, output_dim), ko)
    return params


# -----------------------------------------------------------------------------
# Pure-JAX reference (correctness check only)
# -----------------------------------------------------------------------------
def elman_rnn_reference(params, x_btd, num_layers):
    x = jnp.transpose(x_btd, (1, 0, 2)).astype(jnp.float32)
    h = jnp.maximum(jnp.einsum("tbd,de->tbe", x, params["init_w"])
                    + params["init_b"], 0.0)
    layer_in = h
    T, B, _ = x.shape
    for l in range(num_layers):
        outs = []
        for dname, rev in (("fwd", False), ("bwd", True)):
            w_ih, w_hh, b = params[f"rnn_l{l}_{dname}"]
            H = w_hh.shape[1]
            hid = jnp.zeros((B, H), jnp.float32)
            buf = [None] * T
            order = range(T - 1, -1, -1) if rev else range(T)
            for t in order:
                hid = jnp.tanh(layer_in[t] @ w_ih + hid @ w_hh + b)
                buf[t] = hid
            outs.append(jnp.stack(buf, axis=0))
        layer_in = jnp.concatenate(outs, axis=-1)
    return layer_in[-1] @ params["out_w"] + params["out_b"]


if __name__ == "__main__":
    # Small shapes consistent with the module's forward():
    batch_size, seq_len, input_dim, hidden_dim = 2, 8, 4, 32
    output_dim, num_layers = 1, 2

    key = jax.random.PRNGKey(0)
    k_param, k_x = jax.random.split(key)
    params = init_params(k_param, input_dim, hidden_dim, output_dim, num_layers)
    x = jax.random.normal(k_x, (batch_size, seq_len, input_dim), jnp.float32)

    # Pack weights ONCE, outside the forward path.
    packed = pack_params(params, num_layers=num_layers, hidden_dim=hidden_dim,
                         input_dim=input_dim, output_dim=output_dim)

    y = elman_rnn_forward(packed, x, num_layers=num_layers,
                          hidden_dim=hidden_dim, output_dim=output_dim)
    y = jax.block_until_ready(y)

    y_ref = elman_rnn_reference(params, x, num_layers)
    assert y.shape == (batch_size, output_dim)
    assert jnp.allclose(y, y_ref, atol=1e-4, rtol=1e-4), (y, y_ref)

    print("KERNEL_OK")
</pallas_src>

<mosaic_0001>
module attributes {stable_mosaic.version = 11 : i64} {
  func.func @_fused_elman_kernel(%arg0: memref<64x128xf32, #tpu.memory_space<vmem>>, %arg1: memref<128x128xf32, #tpu.memory_space<vmem>>, %arg2: memref<1x128xf32, #tpu.memory_space<vmem>>, %arg3: memref<128x128xf32, #tpu.memory_space<vmem>>, %arg4: memref<128x128xf32, #tpu.memory_space<vmem>>, %arg5: memref<1x128xf32, #tpu.memory_space<vmem>>, %arg6: memref<128x128xf32, #tpu.memory_space<vmem>>, %arg7: memref<128x128xf32, #tpu.memory_space<vmem>>, %arg8: memref<128x128xf32, #tpu.memory_space<vmem>>, %arg9: memref<1x128xf32, #tpu.memory_space<vmem>>, %arg10: memref<128x128xf32, #tpu.memory_space<vmem>>, %arg11: memref<128x128xf32, #tpu.memory_space<vmem>>, %arg12: memref<128x128xf32, #tpu.memory_space<vmem>>, %arg13: memref<1x128xf32, #tpu.memory_space<vmem>>, %arg14: memref<8x128xf32, #tpu.memory_space<vmem>>, %arg15: memref<64x128xf32, #tpu.memory_space<vmem>>, %arg16: memref<64x128xf32, #tpu.memory_space<vmem>>, %arg17: memref<64x128xf32, #tpu.memory_space<vmem>>, %arg18: memref<64x128xf32, #tpu.memory_space<vmem>>, %arg19: memref<64x128xf32, #tpu.memory_space<vmem>>) attributes {dimension_semantics = [], scalar_prefetch = 0 : i64, scratch_operands = 5 : i64, tpu.core_type = #tpu.core_type<tc>} {
    %c0 = arith.constant 0 : index
    %c0_0 = arith.constant 0 : index
    %0 = vector.load %arg0[%c0, %c0_0] : memref<64x128xf32, #tpu.memory_space<vmem>>, vector<64x128xf32>
    %c0_1 = arith.constant 0 : index
    %c0_2 = arith.constant 0 : index
    %1 = vector.load %arg1[%c0_1, %c0_2] : memref<128x128xf32, #tpu.memory_space<vmem>>, vector<128x128xf32>
    %cst = arith.constant dense<0.000000e+00> : vector<64x128xf32>
    %2 = tpu.matmul %0, %1, %cst {dimension_numbers = #tpu.dot_dimension_numbers<[1], [0], [0], [1], [0, 0, 1, 1], [], []>} : vector<64x128xf32>, vector<128x128xf32>, vector<64x128xf32> -> vector<64x128xf32>
    %c0_3 = arith.constant 0 : index
    %c0_4 = arith.constant 0 : index
    %3 = vector.load %arg2[%c0_3, %c0_4] : memref<1x128xf32, #tpu.memory_space<vmem>>, vector<1x128xf32>
    %4 = vector.broadcast %3 : vector<1x128xf32> to vector<64x128xf32>
    %5 = arith.addf %2, %4 : vector<64x128xf32>
    %cst_5 = arith.constant 0.000000e+00 : f32
    %6 = vector.broadcast %cst_5 : f32 to vector<64x128xf32>
    %7 = arith.maximumf %5, %6 : vector<64x128xf32>
    %c0_6 = arith.constant 0 : index
    %c0_7 = arith.constant 0 : index
    %8 = vector.load %arg15[%c0_6, %c0_7] : memref<64x128xf32, #tpu.memory_space<vmem>>, vector<64x128xf32>
    tpu.vector_store %arg15[%c0_6, %c0_7], %7 {strides = array<i32>} : memref<64x128xf32, #tpu.memory_space<vmem>>, vector<64x128xf32>,
    %9 = vector.extract_strided_slice %7 {offsets = [0, 0], sizes = [8, 128], strides = [1, 1]} : vector<64x128xf32> to vector<8x128xf32>
    %c56 = arith.constant 56 : index
    %c0_8 = arith.constant 0 : index
    %10 = vector.load %arg16[%c56, %c0_8] : memref<64x128xf32, #tpu.memory_space<vmem>>, vector<8x128xf32>
    tpu.vector_store %arg16[%c56, %c0_8], %9 {strides = array<i32>} : memref<64x128xf32, #tpu.memory_space<vmem>>, vector<8x128xf32>,
    %11 = vector.extract_strided_slice %7 {offsets = [8, 0], sizes = [8, 128], strides = [1, 1]} : vector<64x128xf32> to vector<8x128xf32>
    %c48 = arith.constant 48 : index
    %c0_9 = arith.constant 0 : index
    %12 = vector.load %arg16[%c48, %c0_9] : memref<64x128xf32, #tpu.memory_space<vmem>>, vector<8x128xf32>
    tpu.vector_store %arg16[%c48, %c0_9], %11 {strides = array<i32>} : memref<64x128xf32, #tpu.memory_space<vmem>>, vector<8x128xf32>,
    %13 = vector.extract_strided_slice %7 {offsets = [16, 0], sizes = [8, 128], strides = [1, 1]} : vector<64x128xf32> to vector<8x128xf32>
    %c40 = arith.constant 40 : index
    %c0_10 = arith.constant 0 : index
    %14 = vector.load %arg16[%c40, %c0_10] : memref<64x128xf32, #tpu.memory_space<vmem>>, vector<8x128xf32>
    tpu.vector_store %arg16[%c40, %c0_10], %13 {strides = array<i32>} : memref<64x128xf32, #tpu.memory_space<vmem>>, vector<8x128xf32>,
    %15 = vector.extract_strided_slice %7 {offsets = [24, 0], sizes = [8, 128], strides = [1, 1]} : vector<64x128xf32> to vector<8x128xf32>
    %c32 = arith.constant 32 : index
    %c0_11 = arith.constant 0 : index
    %16 = vector.load %arg16[%c32, %c0_11] : memref<64x128xf32, #tpu.memory_space<vmem>>, vector<8x128xf32>
    tpu.vector_store %arg16[%c32, %c0_11], %15 {strides = array<i32>} : memref<64x128xf32, #tpu.memory_space<vmem>>, vector<8x128xf32>,
    %17 = vector.extract_strided_slice %7 {offsets = [32, 0], sizes = [8, 128], strides = [1, 1]} : vector<64x128xf32> to vector<8x128xf32>
    %c24 = arith.constant 24 : index
    %c0_12 = arith.constant 0 : index
    %18 = vector.load %arg16[%c24, %c0_12] : memref<64x128xf32, #tpu.memory_space<vmem>>, vector<8x128xf32>
    tpu.vector_store %arg16[%c24, %c0_12], %17 {strides = array<i32>} : memref<64x128xf32, #tpu.memory_space<vmem>>, vector<8x128xf32>,
    %19 = vector.extract_strided_slice %7 {offsets = [40, 0], sizes = [8, 128], strides = [1, 1]} : vector<64x128xf32> to vector<8x128xf32>
    %c16 = arith.constant 16 : index
    %c0_13 = arith.constant 0 : index
    %20 = vector.load %arg16[%c16, %c0_13] : memref<64x128xf32, #tpu.memory_space<vmem>>, vector<8x128xf32>
    tpu.vector_store %arg16[%c16, %c0_13], %19 {strides = array<i32>} : memref<64x128xf32, #tpu.memory_space<vmem>>, vector<8x128xf32>,
    %21 = vector.extract_strided_slice %7 {offsets = [48, 0], sizes = [8, 128], strides = [1, 1]} : vector<64x128xf32> to vector<8x128xf32>
    %c8 = arith.constant 8 : index
    %c0_14 = arith.constant 0 : index
    %22 = vector.load %arg16[%c8, %c0_14] : memref<64x128xf32, #tpu.memory_space<vmem>>, vector<8x128xf32>
    tpu.vector_store %arg16[%c8, %c0_14], %21 {strides = array<i32>} : memref<64x128xf32, #tpu.memory_space<vmem>>, vector<8x128xf32>,
    %23 = vector.extract_strided_slice %7 {offsets = [56, 0], sizes = [8, 128], strides = [1, 1]} : vector<64x128xf32> to vector<8x128xf32>
    %c0_15 = arith.constant 0 : index
    %c0_16 = arith.constant 0 : index
    %24 = vector.load %arg16[%c0_15, %c0_16] : memref<64x128xf32, #tpu.memory_space<vmem>>, vector<8x128xf32>
    tpu.vector_store %arg16[%c0_15, %c0_16], %23 {strides = array<i32>} : memref<64x128xf32, #tpu.memory_space<vmem>>, vector<8x128xf32>,
    %c0_17 = arith.constant 0 : index
    %c0_18 = arith.constant 0 : index
    %25 = vector.load %arg15[%c0_17, %c0_18] : memref<64x128xf32, #tpu.memory_space<vmem>>, vector<64x128xf32>
    %c0_19 = arith.constant 0 : index
    %c0_20 = arith.constant 0 : index
    %26 = vector.load %arg3[%c0_19, %c0_20] : memref<128x128xf32, #tpu.memory_space<vmem>>, vector<128x128xf32>
    %cst_21 = arith.constant dense<0.000000e+00> : vector<64x128xf32>
    %27 = tpu.matmul %25, %26, %cst_21 {dimension_numbers = #tpu.dot_dimension_numbers<[1], [0], [0], [1], [0, 0, 1, 1], [], []>} : vector<64x128xf32>, vector<128x128xf32>, vector<64x128xf32> -> vector<64x128xf32>
    %c0_22 = arith.constant 0 : index
    %c0_23 = arith.constant 0 : index
    %28 = vector.load %arg16[%c0_22, %c0_23] : memref<64x128xf32, #tpu.memory_space<vmem>>, vector<64x128xf32>
    %c0_24 = arith.constant 0 : index
    %c0_25 = arith.constant 0 : index
    %29 = vector.load %arg4[%c0_24, %c0_25] : memref<128x128xf32, #tpu.memory_space<vmem>>, vector<128x128xf32>
    %cst_26 = arith.constant dense<0.000000e+00> : vector<64x128xf32>
    %30 = tpu.matmul %28, %29, %cst_26 {dimension_numbers = #tpu.dot_dimension_numbers<[1], [0], [0], [1], [0, 0, 1, 1], [], []>} : vector<64x128xf32>, vector<128x128xf32>, vector<64x128xf32> -> vector<64x128xf32>
    %31 = arith.addf %27, %30 : vector<64x128xf32>
    %c0_27 = arith.constant 0 : index
    %c0_28 = arith.constant 0 : index
    %32 = vector.load %arg5[%c0_27, %c0_28] : memref<1x128xf32, #tpu.memory_space<vmem>>, vector<1x128xf32>
    %33 = vector.broadcast %32 : vector<1x128xf32> to vector<64x128xf32>
    %34 = arith.addf %31, %33 : vector<64x128xf32>
    %c0_29 = arith.constant 0 : index
    %c0_30 = arith.constant 0 : index
    %35 = vector.load %arg19[%c0_29, %c0_30] : memref<64x128xf32, #tpu.memory_space<vmem>>, vector<64x128xf32>
    tpu.vector_store %arg19[%c0_29, %c0_30], %34 {strides = array<i32>} : memref<64x128xf32, #tpu.memory_space<vmem>>, vector<64x128xf32>,
    %c0_31 = arith.constant 0 : index
    %c0_32 = arith.constant 0 : index
    %36 = vector.load %arg6[%c0_31, %c0_32] : memref<128x128xf32, #tpu.memory_space<vmem>>, vector<128x128xf32>
    %cst_33 = arith.constant 0.000000e+00 : f32
    %37 = vector.broadcast %cst_33 : f32 to vector<8x128xf32>
    %c0_i32 = arith.constant 0 : i32
    %c8_i32 = arith.constant 8 : i32
    %38 = arith.muli %c0_i32, %c8_i32 : i32
    %39 = tpu.assume_multiple %38, 8 : i32
    %40 = arith.index_cast %39 : i32 to index
    %c0_34 = arith.constant 0 : index
    %41 = vector.load %arg19[%40, %c0_34] : memref<64x128xf32, #tpu.memory_space<vmem>>, vector<8x128xf32>
    %cst_35 = arith.constant dense<0.000000e+00> : vector<8x128xf32>
    %42 = tpu.matmul %37, %36, %cst_35 {dimension_numbers = #tpu.dot_dimension_numbers<[1], [0], [0], [1], [0, 0, 1, 1], [], []>} : vector<8x128xf32>, vector<128x128xf32>, vector<8x128xf32> -> vector<8x128xf32>
    %43 = arith.addf %41, %42 : vector<8x128xf32>
    %44 = math.tanh %43 : vector<8x128xf32>
    %45 = arith.index_cast %39 : i32 to index
    %c0_36 = arith.constant 0 : index
    %46 = vector.load %arg17[%45, %c0_36] : memref<64x128xf32, #tpu.memory_space<vmem>>, vector<8x128xf32>
    tpu.vector_store %arg17[%45, %c0_36], %44 {strides = array<i32>} : memref<64x128xf32, #tpu.memory_space<vmem>>, vector<8x128xf32>,
    %c7_i32 = arith.constant 7 : i32
    %47 = arith.subi %c7_i32, %c0_i32 : i32
    %c8_i32_37 = arith.constant 8 : i32
    %48 = arith.muli %47, %c8_i32_37 : i32
    %49 = tpu.assume_multiple %48, 8 : i32
    %50 = arith.index_cast %49 : i32 to index
    %c0_38 = arith.constant 0 : index
    %51 = vector.load %arg18[%50, %c0_38] : memref<64x128xf32, #tpu.memory_space<vmem>>, vector<8x128xf32>
    tpu.vector_store %arg18[%50, %c0_38], %44 {strides = array<i32>} : memref<64x128xf32, #tpu.memory_space<vmem>>, vector<8x128xf32>,
    %c1_i32 = arith.constant 1 : i32
    %c8_i32_39 = arith.constant 8 : i32
    %52 = arith.muli %c1_i32, %c8_i32_39 : i32
    %53 = tpu.assume_multiple %52, 8 : i32
    %54 = arith.index_cast %53 : i32 to index
    %c0_40 = arith.constant 0 : index
    %55 = vector.load %arg19[%54, %c0_40] : memref<64x128xf32, #tpu.memory_space<vmem>>, vector<8x128xf32>
    %cst_41 = arith.constant dense<0.000000e+00> : vector<8x128xf32>
    %56 = tpu.matmul %44, %36, %cst_41 {dimension_numbers = #tpu.dot_dimension_numbers<[1], [0], [0], [1], [0, 0, 1, 1], [], []>} : vector<8x128xf32>, vector<128x128xf32>, vector<8x128xf32> -> vector<8x128xf32>
    %57 = arith.addf %55, %56 : vector<8x128xf32>
    %58 = math.tanh %57 : vector<8x128xf32>
    %59 = arith.index_cast %53 : i32 to index
    %c0_42 = arith.constant 0 : index
    %60 = vector.load %arg17[%59, %c0_42] : memref<64x128xf32, #tpu.memory_space<vmem>>, vector<8x128xf32>
    tpu.vector_store %arg17[%59, %c0_42], %58 {strides = array<i32>} : memref<64x128xf32, #tpu.memory_space<vmem>>, vector<8x128xf32>,
    %c7_i32_43 = arith.constant 7 : i32
    %61 = arith.subi %c7_i32_43, %c1_i32 : i32
    %c8_i32_44 = arith.constant 8 : i32
    %62 = arith.muli %61, %c8_i32_44 : i32
    %63 = tpu.assume_multiple %62, 8 : i32
    %64 = arith.index_cast %63 : i32 to index
    %c0_45 = arith.constant 0 : index
    %65 = vector.load %arg18[%64, %c0_45] : memref<64x128xf32, #tpu.memory_space<vmem>>, vector<8x128xf32>
    tpu.vector_store %arg18[%64, %c0_45], %58 {strides = array<i32>} : memref<64x128xf32, #tpu.memory_space<vmem>>, vector<8x128xf32>,
    %c2_i32 = arith.constant 2 : i32
    %c8_i32_46 = arith.constant 8 : i32
    %66 = arith.muli %c2_i32, %c8_i32_46 : i32
    %67 = tpu.assume_multiple %66, 8 : i32
    %68 = arith.index_cast %67 : i32 to index
    %c0_47 = arith.constant 0 : index
    %69 = vector.load %arg19[%68, %c0_47] : memref<64x128xf32, #tpu.memory_space<vmem>>, vector<8x128xf32>
    %cst_48 = arith.constant dense<0.000000e+00> : vector<8x128xf32>
    %70 = tpu.matmul %58, %36, %cst_48 {dimension_numbers = #tpu.dot_dimension_numbers<[1], [0], [0], [1], [0, 0, 1, 1], [], []>} : vector<8x128xf32>, vector<128x128xf32>, vector<8x128xf32> -> vector<8x128xf32>
    %71 = arith.addf %69, %70 : vector<8x128xf32>
    %72 = math.tanh %71 : vector<8x128xf32>
    %73 = arith.index_cast %67 : i32 to index
    %c0_49 = arith.constant 0 : index
    %74 = vector.load %arg17[%73, %c0_49] : memref<64x128xf32, #tpu.memory_space<vmem>>, vector<8x128xf32>
    tpu.vector_store %arg17[%73, %c0_49], %72 {strides = array<i32>} : memref<64x128xf32, #tpu.memory_space<vmem>>, vector<8x128xf32>,
    %c7_i32_50 = arith.constant 7 : i32
    %75 = arith.subi %c7_i32_50, %c2_i32 : i32
    %c8_i32_51 = arith.constant 8 : i32
    %76 = arith.muli %75, %c8_i32_51 : i32
    %77 = tpu.assume_multiple %76, 8 : i32
    %78 = arith.index_cast %77 : i32 to index
    %c0_52 = arith.constant 0 : index
    %79 = vector.load %arg18[%78, %c0_52] : memref<64x128xf32, #tpu.memory_space<vmem>>, vector<8x128xf32>
    tpu.vector_store %arg18[%78, %c0_52], %72 {strides = array<i32>} : memref<64x128xf32, #tpu.memory_space<vmem>>, vector<8x128xf32>,
    %c3_i32 = arith.constant 3 : i32
    %c8_i32_53 = arith.constant 8 : i32
    %80 = arith.muli %c3_i32, %c8_i32_53 : i32
    %81 = tpu.assume_multiple %80, 8 : i32
    %82 = arith.index_cast %81 : i32 to index
    %c0_54 = arith.constant 0 : index
    %83 = vector.load %arg19[%82, %c0_54] : memref<64x128xf32, #tpu.memory_space<vmem>>, vector<8x128xf32>
    %cst_55 = arith.constant dense<0.000000e+00> : vector<8x128xf32>
    %84 = tpu.matmul %72, %36, %cst_55 {dimension_numbers = #tpu.dot_dimension_numbers<[1], [0], [0], [1], [0, 0, 1, 1], [], []>} : vector<8x128xf32>, vector<128x128xf32>, vector<8x128xf32> -> vector<8x128xf32>
    %85 = arith.addf %83, %84 : vector<8x128xf32>
    %86 = math.tanh %85 : vector<8x128xf32>
    %87 = arith.index_cast %81 : i32 to index
    %c0_56 = arith.constant 0 : index
    %88 = vector.load %arg17[%87, %c0_56] : memref<64x128xf32, #tpu.memory_space<vmem>>, vector<8x128xf32>
    tpu.vector_store %arg17[%87, %c0_56], %86 {strides = array<i32>} : memref<64x128xf32, #tpu.memory_space<vmem>>, vector<8x128xf32>,
    %c7_i32_57 = arith.constant 7 : i32
    %89 = arith.subi %c7_i32_57, %c3_i32 : i32
    %c8_i32_58 = arith.constant 8 : i32
    %90 = arith.muli %89, %c8_i32_58 : i32
    %91 = tpu.assume_multiple %90, 8 : i32
    %92 = arith.index_cast %91 : i32 to index
    %c0_59 = arith.constant 0 : index
    %93 = vector.load %arg18[%92, %c0_59] : memref<64x128xf32, #tpu.memory_space<vmem>>, vector<8x128xf32>
    tpu.vector_store %arg18[%92, %c0_59], %86 {strides = array<i32>} : memref<64x128xf32, #tpu.memory_space<vmem>>, vector<8x128xf32>,
    %c4_i32 = arith.constant 4 : i32
    %c8_i32_60 = arith.constant 8 : i32
    %94 = arith.muli %c4_i32, %c8_i32_60 : i32
    %95 = tpu.assume_multiple %94, 8 : i32
    %96 = arith.index_cast %95 : i32 to index
    %c0_61 = arith.constant 0 : index
    %97 = vector.load %arg19[%96, %c0_61] : memref<64x128xf32, #tpu.memory_space<vmem>>, vector<8x128xf32>
    %cst_62 = arith.constant dense<0.000000e+00> : vector<8x128xf32>
    %98 = tpu.matmul %86, %36, %cst_62 {dimension_numbers = #tpu.dot_dimension_numbers<[1], [0], [0], [1], [0, 0, 1, 1], [], []>} : vector<8x128xf32>, vector<128x128xf32>, vector<8x128xf32> -> vector<8x128xf32>
    %99 = arith.addf %97, %98 : vector<8x128xf32>
    %100 = math.tanh %99 : vector<8x128xf32>
    %101 = arith.index_cast %95 : i32 to index
    %c0_63 = arith.constant 0 : index
    %102 = vector.load %arg17[%101, %c0_63] : memref<64x128xf32, #tpu.memory_space<vmem>>, vector<8x128xf32>
    tpu.vector_store %arg17[%101, %c0_63], %100 {strides = array<i32>} : memref<64x128xf32, #tpu.memory_space<vmem>>, vector<8x128xf32>,
    %c7_i32_64 = arith.constant 7 : i32
    %103 = arith.subi %c7_i32_64, %c4_i32 : i32
    %c8_i32_65 = arith.constant 8 : i32
    %104 = arith.muli %103, %c8_i32_65 : i32
    %105 = tpu.assume_multiple %104, 8 : i32
    %106 = arith.index_cast %105 : i32 to index
    %c0_66 = arith.constant 0 : index
    %107 = vector.load %arg18[%106, %c0_66] : memref<64x128xf32, #tpu.memory_space<vmem>>, vector<8x128xf32>
    tpu.vector_store %arg18[%106, %c0_66], %100 {strides = array<i32>} : memref<64x128xf32, #tpu.memory_space<vmem>>, vector<8x128xf32>,
    %c5_i32 = arith.constant 5 : i32
    %c8_i32_67 = arith.constant 8 : i32
    %108 = arith.muli %c5_i32, %c8_i32_67 : i32
    %109 = tpu.assume_multiple %108, 8 : i32
    %110 = arith.index_cast %109 : i32 to index
    %c0_68 = arith.constant 0 : index
    %111 = vector.load %arg19[%110, %c0_68] : memref<64x128xf32, #tpu.memory_space<vmem>>, vector<8x128xf32>
    %cst_69 = arith.constant dense<0.000000e+00> : vector<8x128xf32>
    %112 = tpu.matmul %100, %36, %cst_69 {dimension_numbers = #tpu.dot_dimension_numbers<[1], [0], [0], [1], [0, 0, 1, 1], [], []>} : vector<8x128xf32>, vector<128x128xf32>, vector<8x128xf32> -> vector<8x128xf32>
    %113 = arith.addf %111, %112 : vector<8x128xf32>
    %114 = math.tanh %113 : vector<8x128xf32>
    %115 = arith.index_cast %109 : i32 to index
    %c0_70 = arith.constant 0 : index
    %116 = vector.load %arg17[%115, %c0_70] : memref<64x128xf32, #tpu.memory_space<vmem>>, vector<8x128xf32>
    tpu.vector_store %arg17[%115, %c0_70], %114 {strides = array<i32>} : memref<64x128xf32, #tpu.memory_space<vmem>>, vector<8x128xf32>,
    %c7_i32_71 = arith.constant 7 : i32
    %117 = arith.subi %c7_i32_71, %c5_i32 : i32
    %c8_i32_72 = arith.constant 8 : i32
    %118 = arith.muli %117, %c8_i32_72 : i32
    %119 = tpu.assume_multiple %118, 8 : i32
    %120 = arith.index_cast %119 : i32 to index
    %c0_73 = arith.constant 0 : index
    %121 = vector.load %arg18[%120, %c0_73] : memref<64x128xf32, #tpu.memory_space<vmem>>, vector<8x128xf32>
    tpu.vector_store %arg18[%120, %c0_73], %114 {strides = array<i32>} : memref<64x128xf32, #tpu.memory_space<vmem>>, vector<8x128xf32>,
    %c6_i32 = arith.constant 6 : i32
    %c8_i32_74 = arith.constant 8 : i32
    %122 = arith.muli %c6_i32, %c8_i32_74 : i32
    %123 = tpu.assume_multiple %122, 8 : i32
    %124 = arith.index_cast %123 : i32 to index
    %c0_75 = arith.constant 0 : index
    %125 = vector.load %arg19[%124, %c0_75] : memref<64x128xf32, #tpu.memory_space<vmem>>, vector<8x128xf32>
    %cst_76 = arith.constant dense<0.000000e+00> : vector<8x128xf32>
    %126 = tpu.matmul %114, %36, %cst_76 {dimension_numbers = #tpu.dot_dimension_numbers<[1], [0], [0], [1], [0, 0, 1, 1], [], []>} : vector<8x128xf32>, vector<128x128xf32>, vector<8x128xf32> -> vector<8x128xf32>
    %127 = arith.addf %125, %126 : vector<8x128xf32>
    %128 = math.tanh %127 : vector<8x128xf32>
    %129 = arith.index_cast %123 : i32 to index
    %c0_77 = arith.constant 0 : index
    %130 = vector.load %arg17[%129, %c0_77] : memref<64x128xf32, #tpu.memory_space<vmem>>, vector<8x128xf32>
    tpu.vector_store %arg17[%129, %c0_77], %128 {strides = array<i32>} : memref<64x128xf32, #tpu.memory_space<vmem>>, vector<8x128xf32>,
    %c7_i32_78 = arith.constant 7 : i32
    %131 = arith.subi %c7_i32_78, %c6_i32 : i32
    %c8_i32_79 = arith.constant 8 : i32
    %132 = arith.muli %131, %c8_i32_79 : i32
    %133 = tpu.assume_multiple %132, 8 : i32
    %134 = arith.index_cast %133 : i32 to index
    %c0_80 = arith.constant 0 : index
    %135 = vector.load %arg18[%134, %c0_80] : memref<64x128xf32, #tpu.memory_space<vmem>>, vector<8x128xf32>
    tpu.vector_store %arg18[%134, %c0_80], %128 {strides = array<i32>} : memref<64x128xf32, #tpu.memory_space<vmem>>, vector<8x128xf32>,
    %c7_i32_81 = arith.constant 7 : i32
    %c8_i32_82 = arith.constant 8 : i32
    %136 = arith.muli %c7_i32_81, %c8_i32_82 : i32
    %137 = tpu.assume_multiple %136, 8 : i32
    %138 = arith.index_cast %137 : i32 to index
    %c0_83 = arith.constant 0 : index
    %139 = vector.load %arg19[%138, %c0_83] : memref<64x128xf32, #tpu.memory_space<vmem>>, vector<8x128xf32>
    %cst_84 = arith.constant dense<0.000000e+00> : vector<8x128xf32>
    %140 = tpu.matmul %128, %36, %cst_84 {dimension_numbers = #tpu.dot_dimension_numbers<[1], [0], [0], [1], [0, 0, 1, 1], [], []>} : vector<8x128xf32>, vector<128x128xf32>, vector<8x128xf32> -> vector<8x128xf32>
    %141 = arith.addf %139, %140 : vector<8x128xf32>
    %142 = math.tanh %141 : vector<8x128xf32>
    %143 = arith.index_cast %137 : i32 to index
    %c0_85 = arith.constant 0 : index
    %144 = vector.load %arg17[%143, %c0_85] : memref<64x128xf32, #tpu.memory_space<vmem>>, vector<8x128xf32>
    tpu.vector_store %arg17[%143, %c0_85], %142 {strides = array<i32>} : memref<64x128xf32, #tpu.memory_space<vmem>>, vector<8x128xf32>,
    %c7_i32_86 = arith.constant 7 : i32
    %145 = arith.subi %c7_i32_86, %c7_i32_81 : i32
    %c8_i32_87 = arith.constant 8 : i32
    %146 = arith.muli %145, %c8_i32_87 : i32
    %147 = tpu.assume_multiple %146, 8 : i32
    %148 = arith.index_cast %147 : i32 to index
    %c0_88 = arith.constant 0 : index
    %149 = vector.load %arg18[%148, %c0_88] : memref<64x128xf32, #tpu.memory_space<vmem>>, vector<8x128xf32>
    tpu.vector_store %arg18[%148, %c0_88], %142 {strides = array<i32>} : memref<64x128xf32, #tpu.memory_space<vmem>>, vector<8x128xf32>,
    %c8_i32_89 = arith.constant 8 : i32
    %c0_90 = arith.constant 0 : index
    %c0_91 = arith.constant 0 : index
    %150 = vector.load %arg17[%c0_90, %c0_91] : memref<64x128xf32, #tpu.memory_space<vmem>>, vector<64x128xf32>
    %c0_92 = arith.constant 0 : index
    %c0_93 = arith.constant 0 : index
    %151 = vector.load %arg7[%c0_92, %c0_93] : memref<128x128xf32, #tpu.memory_space<vmem>>, vector<128x128xf32>
    %cst_94 = arith.constant dense<0.000000e+00> : vector<64x128xf32>
    %152 = tpu.matmul %150, %151, %cst_94 {dimension_numbers = #tpu.dot_dimension_numbers<[1], [0], [0], [1], [0, 0, 1, 1], [], []>} : vector<64x128xf32>, vector<128x128xf32>, vector<64x128xf32> -> vector<64x128xf32>
    %c0_95 = arith.constant 0 : index
    %c0_96 = arith.constant 0 : index
    %153 = vector.load %arg18[%c0_95, %c0_96] : memref<64x128xf32, #tpu.memory_space<vmem>>, vector<64x128xf32>
    %c0_97 = arith.constant 0 : index
    %c0_98 = arith.constant 0 : index
    %154 = vector.load %arg8[%c0_97, %c0_98] : memref<128x128xf32, #tpu.memory_space<vmem>>, vector<128x128xf32>
    %cst_99 = arith.constant dense<0.000000e+00> : vector<64x128xf32>
    %155 = tpu.matmul %153, %154, %cst_99 {dimension_numbers = #tpu.dot_dimension_numbers<[1], [0], [0], [1], [0, 0, 1, 1], [], []>} : vector<64x128xf32>, vector<128x128xf32>, vector<64x128xf32> -> vector<64x128xf32>
    %156 = arith.addf %152, %155 : vector<64x128xf32>
    %c0_100 = arith.constant 0 : index
    %c0_101 = arith.constant 0 : index
    %157 = vector.load %arg9[%c0_100, %c0_101] : memref<1x128xf32, #tpu.memory_space<vmem>>, vector<1x128xf32>
    %158 = vector.broadcast %157 : vector<1x128xf32> to vector<64x128xf32>
    %159 = arith.addf %156, %158 : vector<64x128xf32>
    %c0_102 = arith.constant 0 : index
    %c0_103 = arith.constant 0 : index
    %160 = vector.load %arg19[%c0_102, %c0_103] : memref<64x128xf32, #tpu.memory_space<vmem>>, vector<64x128xf32>
    tpu.vector_store %arg19[%c0_102, %c0_103], %159 {strides = array<i32>} : memref<64x128xf32, #tpu.memory_space<vmem>>, vector<64x128xf32>,
    %c0_104 = arith.constant 0 : index
    %c0_105 = arith.constant 0 : index
    %161 = vector.load %arg10[%c0_104, %c0_105] : memref<128x128xf32, #tpu.memory_space<vmem>>, vector<128x128xf32>
    %cst_106 = arith.constant 0.000000e+00 : f32
    %162 = vector.broadcast %cst_106 : f32 to vector<8x128xf32>
    %c0_i32_107 = arith.constant 0 : i32
    %c8_i32_108 = arith.constant 8 : i32
    %163 = arith.muli %c0_i32_107, %c8_i32_108 : i32
    %164 = tpu.assume_multiple %163, 8 : i32
    %165 = arith.index_cast %164 : i32 to index
    %c0_109 = arith.constant 0 : index
    %166 = vector.load %arg19[%165, %c0_109] : memref<64x128xf32, #tpu.memory_space<vmem>>, vector<8x128xf32>
    %cst_110 = arith.constant dense<0.000000e+00> : vector<8x128xf32>
    %167 = tpu.matmul %162, %161, %cst_110 {dimension_numbers = #tpu.dot_dimension_numbers<[1], [0], [0], [1], [0, 0, 1, 1], [], []>} : vector<8x128xf32>, vector<128x128xf32>, vector<8x128xf32> -> vector<8x128xf32>
    %168 = arith.addf %166, %167 : vector<8x128xf32>
    %169 = math.tanh %168 : vector<8x128xf32>
    %170 = arith.index_cast %164 : i32 to index
    %c0_111 = arith.constant 0 : index
    %171 = vector.load %arg15[%170, %c0_111] : memref<64x128xf32, #tpu.memory_space<vmem>>, vector<8x128xf32>
    tpu.vector_store %arg15[%170, %c0_111], %169 {strides = array<i32>} : memref<64x128xf32, #tpu.memory_space<vmem>>, vector<8x128xf32>,
    %c1_i32_112 = arith.constant 1 : i32
    %c8_i32_113 = arith.constant 8 : i32
    %172 = arith.muli %c1_i32_112, %c8_i32_113 : i32
    %173 = tpu.assume_multiple %172, 8 : i32
    %174 = arith.index_cast %173 : i32 to index
    %c0_114 = arith.constant 0 : index
    %175 = vector.load %arg19[%174, %c0_114] : memref<64x128xf32, #tpu.memory_space<vmem>>, vector<8x128xf32>
    %cst_115 = arith.constant dense<0.000000e+00> : vector<8x128xf32>
    %176 = tpu.matmul %169, %161, %cst_115 {dimension_numbers = #tpu.dot_dimension_numbers<[1], [0], [0], [1], [0, 0, 1, 1], [], []>} : vector<8x128xf32>, vector<128x128xf32>, vector<8x128xf32> -> vector<8x128xf32>
    %177 = arith.addf %175, %176 : vector<8x128xf32>
    %178 = math.tanh %177 : vector<8x128xf32>
    %179 = arith.index_cast %173 : i32 to index
    %c0_116 = arith.constant 0 : index
    %180 = vector.load %arg15[%179, %c0_116] : memref<64x128xf32, #tpu.memory_space<vmem>>, vector<8x128xf32>
    tpu.vector_store %arg15[%179, %c0_116], %178 {strides = array<i32>} : memref<64x128xf32, #tpu.memory_space<vmem>>, vector<8x128xf32>,
    %c2_i32_117 = arith.constant 2 : i32
    %c8_i32_118 = arith.constant 8 : i32
    %181 = arith.muli %c2_i32_117, %c8_i32_118 : i32
    %182 = tpu.assume_multiple %181, 8 : i32
    %183 = arith.index_cast %182 : i32 to index
    %c0_119 = arith.constant 0 : index
    %184 = vector.load %arg19[%183, %c0_119] : memref<64x128xf32, #tpu.memory_space<vmem>>, vector<8x128xf32>
    %cst_120 = arith.constant dense<0.000000e+00> : vector<8x128xf32>
    %185 = tpu.matmul %178, %161, %cst_120 {dimension_numbers = #tpu.dot_dimension_numbers<[1], [0], [0], [1], [0, 0, 1, 1], [], []>} : vector<8x128xf32>, vector<128x128xf32>, vector<8x128xf32> -> vector<8x128xf32>
    %186 = arith.addf %184, %185 : vector<8x128xf32>
    %187 = math.tanh %186 : vector<8x128xf32>
    %188 = arith.index_cast %182 : i32 to index
    %c0_121 = arith.constant 0 : index
    %189 = vector.load %arg15[%188, %c0_121] : memref<64x128xf32, #tpu.memory_space<vmem>>, vector<8x128xf32>
    tpu.vector_store %arg15[%188, %c0_121], %187 {strides = array<i32>} : memref<64x128xf32, #tpu.memory_space<vmem>>, vector<8x128xf32>,
    %c3_i32_122 = arith.constant 3 : i32
    %c8_i32_123 = arith.constant 8 : i32
    %190 = arith.muli %c3_i32_122, %c8_i32_123 : i32
    %191 = tpu.assume_multiple %190, 8 : i32
    %192 = arith.index_cast %191 : i32 to index
    %c0_124 = arith.constant 0 : index
    %193 = vector.load %arg19[%192, %c0_124] : memref<64x128xf32, #tpu.memory_space<vmem>>, vector<8x128xf32>
    %cst_125 = arith.constant dense<0.000000e+00> : vector<8x128xf32>
    %194 = tpu.matmul %187, %161, %cst_125 {dimension_numbers = #tpu.dot_dimension_numbers<[1], [0], [0], [1], [0, 0, 1, 1], [], []>} : vector<8x128xf32>, vector<128x128xf32>, vector<8x128xf32> -> vector<8x128xf32>
    %195 = arith.addf %193, %194 : vector<8x128xf32>
    %196 = math.tanh %195 : vector<8x128xf32>
    %197 = arith.index_cast %191 : i32 to index
    %c0_126 = arith.constant 0 : index
    %198 = vector.load %arg15[%197, %c0_126] : memref<64x128xf32, #tpu.memory_space<vmem>>, vector<8x128xf32>
    tpu.vector_store %arg15[%197, %c0_126], %196 {strides = array<i32>} : memref<64x128xf32, #tpu.memory_space<vmem>>, vector<8x128xf32>,
    %c4_i32_127 = arith.constant 4 : i32
    %c8_i32_128 = arith.constant 8 : i32
    %199 = arith.muli %c4_i32_127, %c8_i32_128 : i32
    %200 = tpu.assume_multiple %199, 8 : i32
    %201 = arith.index_cast %200 : i32 to index
    %c0_129 = arith.constant 0 : index
    %202 = vector.load %arg19[%201, %c0_129] : memref<64x128xf32, #tpu.memory_space<vmem>>, vector<8x128xf32>
    %cst_130 = arith.constant dense<0.000000e+00> : vector<8x128xf32>
    %203 = tpu.matmul %196, %161, %cst_130 {dimension_numbers = #tpu.dot_dimension_numbers<[1], [0], [0], [1], [0, 0, 1, 1], [], []>} : vector<8x128xf32>, vector<128x128xf32>, vector<8x128xf32> -> vector<8x128xf32>
    %204 = arith.addf %202, %203 : vector<8x128xf32>
    %205 = math.tanh %204 : vector<8x128xf32>
    %206 = arith.index_cast %200 : i32 to index
    %c0_131 = arith.constant 0 : index
    %207 = vector.load %arg15[%206, %c0_131] : memref<64x128xf32, #tpu.memory_space<vmem>>, vector<8x128xf32>
    tpu.vector_store %arg15[%206, %c0_131], %205 {strides = array<i32>} : memref<64x128xf32, #tpu.memory_space<vmem>>, vector<8x128xf32>,
    %c5_i32_132 = arith.constant 5 : i32
    %c8_i32_133 = arith.constant 8 : i32
    %208 = arith.muli %c5_i32_132, %c8_i32_133 : i32
    %209 = tpu.assume_multiple %208, 8 : i32
    %210 = arith.index_cast %209 : i32 to index
    %c0_134 = arith.constant 0 : index
    %211 = vector.load %arg19[%210, %c0_134] : memref<64x128xf32, #tpu.memory_space<vmem>>, vector<8x128xf32>
    %cst_135 = arith.constant dense<0.000000e+00> : vector<8x128xf32>
    %212 = tpu.matmul %205, %161, %cst_135 {dimension_numbers = #tpu.dot_dimension_numbers<[1], [0], [0], [1], [0, 0, 1, 1], [], []>} : vector<8x128xf32>, vector<128x128xf32>, vector<8x128xf32> -> vector<8x128xf32>
    %213 = arith.addf %211, %212 : vector<8x128xf32>
    %214 = math.tanh %213 : vector<8x128xf32>
    %215 = arith.index_cast %209 : i32 to index
    %c0_136 = arith.constant 0 : index
    %216 = vector.load %arg15[%215, %c0_136] : memref<64x128xf32, #tpu.memory_space<vmem>>, vector<8x128xf32>
    tpu.vector_store %arg15[%215, %c0_136], %214 {strides = array<i32>} : memref<64x128xf32, #tpu.memory_space<vmem>>, vector<8x128xf32>,
    %c6_i32_137 = arith.constant 6 : i32
    %c8_i32_138 = arith.constant 8 : i32
    %217 = arith.muli %c6_i32_137, %c8_i32_138 : i32
    %218 = tpu.assume_multiple %217, 8 : i32
    %219 = arith.index_cast %218 : i32 to index
    %c0_139 = arith.constant 0 : index
    %220 = vector.load %arg19[%219, %c0_139] : memref<64x128xf32, #tpu.memory_space<vmem>>, vector<8x128xf32>
    %cst_140 = arith.constant dense<0.000000e+00> : vector<8x128xf32>
    %221 = tpu.matmul %214, %161, %cst_140 {dimension_numbers = #tpu.dot_dimension_numbers<[1], [0], [0], [1], [0, 0, 1, 1], [], []>} : vector<8x128xf32>, vector<128x128xf32>, vector<8x128xf32> -> vector<8x128xf32>
    %222 = arith.addf %220, %221 : vector<8x128xf32>
    %223 = math.tanh %222 : vector<8x128xf32>
    %224 = arith.index_cast %218 : i32 to index
    %c0_141 = arith.constant 0 : index
    %225 = vector.load %arg15[%224, %c0_141] : memref<64x128xf32, #tpu.memory_space<vmem>>, vector<8x128xf32>
    tpu.vector_store %arg15[%224, %c0_141], %223 {strides = array<i32>} : memref<64x128xf32, #tpu.memory_space<vmem>>, vector<8x128xf32>,
    %c7_i32_142 = arith.constant 7 : i32
    %c8_i32_143 = arith.constant 8 : i32
    %226 = arith.muli %c7_i32_142, %c8_i32_143 : i32
    %227 = tpu.assume_multiple %226, 8 : i32
    %228 = arith.index_cast %227 : i32 to index
    %c0_144 = arith.constant 0 : index
    %229 = vector.load %arg19[%228, %c0_144] : memref<64x128xf32, #tpu.memory_space<vmem>>, vector<8x128xf32>
    %cst_145 = arith.constant dense<0.000000e+00> : vector<8x128xf32>
    %230 = tpu.matmul %223, %161, %cst_145 {dimension_numbers = #tpu.dot_dimension_numbers<[1], [0], [0], [1], [0, 0, 1, 1], [], []>} : vector<8x128xf32>, vector<128x128xf32>, vector<8x128xf32> -> vector<8x128xf32>
    %231 = arith.addf %229, %230 : vector<8x128xf32>
    %232 = math.tanh %231 : vector<8x128xf32>
    %233 = arith.index_cast %227 : i32 to index
    %c0_146 = arith.constant 0 : index
    %234 = vector.load %arg15[%233, %c0_146] : memref<64x128xf32, #tpu.memory_space<vmem>>, vector<8x128xf32>
    tpu.vector_store %arg15[%233, %c0_146], %232 {strides = array<i32>} : memref<64x128xf32, #tpu.memory_space<vmem>>, vector<8x128xf32>,
    %c8_i32_147 = arith.constant 8 : i32
    %c56_148 = arith.constant 56 : index
    %c0_149 = arith.constant 0 : index
    %235 = vector.load %arg15[%c56_148, %c0_149] : memref<64x128xf32, #tpu.memory_space<vmem>>, vector<8x128xf32>
    %c0_150 = arith.constant 0 : index
    %c0_151 = arith.constant 0 : index
    %236 = vector.load %arg15[%c0_150, %c0_151] : memref<64x128xf32, #tpu.memory_space<vmem>>, vector<8x128xf32>
    %c0_152 = arith.constant 0 : index
    %c0_153 = arith.constant 0 : index
    %237 = vector.load %arg11[%c0_152, %c0_153] : memref<128x128xf32, #tpu.memory_space<vmem>>, vector<128x128xf32>
    %cst_154 = arith.constant dense<0.000000e+00> : vector<8x128xf32>
    %238 = tpu.matmul %235, %237, %cst_154 {dimension_numbers = #tpu.dot_dimension_numbers<[1], [0], [0], [1], [0, 0, 1, 1], [], []>} : vector<8x128xf32>, vector<128x128xf32>, vector<8x128xf32> -> vector<8x128xf32>
    %c0_155 = arith.constant 0 : index
    %c0_156 = arith.constant 0 : index
    %239 = vector.load %arg12[%c0_155, %c0_156] : memref<128x128xf32, #tpu.memory_space<vmem>>, vector<128x128xf32>
    %cst_157 = arith.constant dense<0.000000e+00> : vector<8x128xf32>
    %240 = tpu.matmul %236, %239, %cst_157 {dimension_numbers = #tpu.dot_dimension_numbers<[1], [0], [0], [1], [0, 0, 1, 1], [], []>} : vector<8x128xf32>, vector<128x128xf32>, vector<8x128xf32> -> vector<8x128xf32>
    %241 = arith.addf %238, %240 : vector<8x128xf32>
    %c0_158 = arith.constant 0 : index
    %c0_159 = arith.constant 0 : index
    %242 = vector.load %arg13[%c0_158, %c0_159] : memref<1x128xf32, #tpu.memory_space<vmem>>, vector<1x128xf32>
    %243 = vector.broadcast %242 : vector<1x128xf32> to vector<8x128xf32>
    %244 = arith.addf %241, %243 : vector<8x128xf32>
    %c0_160 = arith.constant 0 : index
    %c0_161 = arith.constant 0 : index
    %245 = vector.load %arg14[%c0_160, %c0_161] : memref<8x128xf32, #tpu.memory_space<vmem>>, vector<8x128xf32>
    tpu.vector_store %arg14[%c0_160, %c0_161], %244 {strides = array<i32>} : memref<8x128xf32, #tpu.memory_space<vmem>>, vector<8x128xf32>,
    return
  }
}

</mosaic_0001>

<bundles_post_ra>
// kernel: elman_rnn_forward.1
= control target key start
LH: loop header
LB: loop body
LE: loop exit
PB: predicated region body
PF: predicated region fallthrough
CT: control target
= control target key end

     0   :  { %19 = vsyncpa [#allocation8], 0  ;;  %s4768_s0 = inlined_call_operand.vmem [shape: f32[64,128], index: 0, kind: input, shape index: {}]   ;;  %s4769_s1 = inlined_call_operand.hbm [shape: f32[128,128], index: 1, kind: input, shape index: {}]   ;;  %s4770_s2 = inlined_call_operand.vmem [shape: f32[1,128], index: 2, kind: input, shape index: {}]   ;;  %s4771_s3 = inlined_call_operand.hbm [shape: f32[128,128], index: 3, kind: input, shape index: {}]   ;;  %s4772_s4 = inlined_call_operand.hbm [shape: f32[128,128], index: 4, kind: input, shape index: {}]   ;;  %s4773_s5 = inlined_call_operand.vmem [shape: f32[1,128], index: 5, kind: input, shape index: {}]   ;;  %s4774_s6 = inlined_call_operand.hbm [shape: f32[128,128], index: 6, kind: input, shape index: {}]   ;;  %s4775_s7 = inlined_call_operand.hbm [shape: f32[128,128], index: 7, kind: input, shape index: {}]   ;;  %s4776_s8 = inlined_call_operand.hbm [shape: f32[128,128], index: 8, kind: input, shape index: {}]   ;;  %s4777_s9 = inlined_call_operand.vmem [shape: f32[1,128], index: 9, kind: input, shape index: {}]   ;;  %s4778_s10 = inlined_call_operand.hbm [shape: f32[128,128], index: 10, kind: input, shape index: {}]   ;;  %s4779_s11 = inlined_call_operand.hbm [shape: f32[128,128], index: 11, kind: input, shape index: {}]   ;;  %s4780_s12 = inlined_call_operand.hbm [shape: f32[128,128], index: 12, kind: input, shape index: {}]   ;;  %s4781_s13 = inlined_call_operand.vmem [shape: f32[1,128], index: 13, kind: input, shape index: {}]   ;;  %s4782_s14 = inlined_call_operand.vmem [shape: f32[8,128], index: 14, kind: output, shape index: {}]  }
   0x1   :  { %20 = vsyncpa [#allocation10], 0 }
   0x2   :  { %21 = vsyncpa [#allocation13], 0 }
   0x3   :  { %22 = vsyncpa [#allocation16], 0 }
   0x4   :  { %23 = vsyncpa [#allocation19], 0  ;;  %s3850_s29 = smov [#allocation9]   ;;  %s3851_s15 = smov [#allocation12]  }
   0x5   :  { %s45_s30 = sshll.u32 %s3850_s29, 4  ;;  %s71_s16 = sshll.u32 %s3851_s15, 4  ;;  %s46_s30 = int_to_ptr.vmem [resolvable:$true] %s45_s30  ;;  %s72_s16 = int_to_ptr.vmem [resolvable:$true] %s71_s16 }
   0x6   :  { %s3668_s17 = scalar_lea.vmem %s46_s30, 2048  ;;  %p3673_p1 = scmp.lt.s32.totalorder %s46_s30, %s46_s30 }
   0x7   :  { %p3669_p0 = scmp.ne.s32.totalorder %s46_s30, %s3668_s17  ;;  %p3674_p2 = scmp.lt.s32.totalorder %s3668_s17, %s3668_s17 }
   0x9   :  { %p3675_p3 = por %p3674_p2, %p3673_p1 }
   0xb   :  { %p3676_p4 = pnand %p3675_p3, %p3669_p0 }
   0xd   :  { %3679 = shalt.err (!%p3676_p4)
}
   0xe   :  { %s3852_s18 = smov 128   ;;  %s3853_s19 = smov 8  }
   0xf   :  { %51 = dma.hbm_to_vmem [thread:$0]  %s4771_s3, 2048, %s46_s30, [#allocation10], %s3852_s18, %s3852_s18, %s3853_s19  }
  0x10   :  { %s3688_s22 = scalar_lea.vmem %s72_s16, 2048  ;;  %p3693_p6 = scmp.lt.s32.totalorder %s72_s16, %s72_s16 }
  0x11   :  { %p3689_p5 = scmp.ne.s32.totalorder %s72_s16, %s3688_s22  ;;  %p3694_p7 = scmp.lt.s32.totalorder %s3688_s22, %s3688_s22 }
  0x13   :  { %p3695_p8 = por %p3694_p7, %p3693_p6 }
  0x15   :  { %p3696_p9 = pnand %p3695_p8, %p3689_p5 }
  0x17   :  { %3699 = shalt.err (!%p3696_p9)
}
  0x18   :  { %77 = dma.hbm_to_vmem [thread:$0]  %s4774_s6, 2048, %s72_s16, [#allocation13], %s3852_s18, %s3852_s18, %s3853_s19  }
  0x19   :  { %s3854_s25 = smov [#allocation15]   ;;  %s3855_s27 = smov [#allocation18]  }
  0x1a   :  { %s95_s26 = sshll.u32 %s3854_s25, 4  ;;  %s121_s28 = sshll.u32 %s3855_s27, 4  ;;  %s96_s26 = int_to_ptr.vmem [resolvable:$true] %s95_s26  ;;  %s122_s28 = int_to_ptr.vmem [resolvable:$true] %s121_s28 }
  0x1b   :  { %s3708_s3 = scalar_lea.vmem %s96_s26, 2048  ;;  %p3713_p11 = scmp.lt.s32.totalorder %s96_s26, %s96_s26 }
  0x1c   :  { %p3709_p10 = scmp.ne.s32.totalorder %s96_s26, %s3708_s3  ;;  %p3714_p12 = scmp.lt.s32.totalorder %s3708_s3, %s3708_s3 }
  0x1e   :  { %p3715_p13 = por %p3714_p12, %p3713_p11 }
  0x20   :  { %p3716_p0 = pnand %p3715_p13, %p3709_p10 }
  0x22   :  { %3719 = shalt.err (!%p3716_p0)
}
  0x23   :  { %101 = dma.hbm_to_vmem [thread:$0]  %s4776_s8, 2048, %s96_s26, [#allocation16], %s3852_s18, %s3852_s18, %s3853_s19  }
  0x24   :  { %s3728_s6 = scalar_lea.vmem %s122_s28, 2048  ;;  %p3733_p2 = scmp.lt.s32.totalorder %s122_s28, %s122_s28 }
  0x25   :  { %p3729_p1 = scmp.ne.s32.totalorder %s122_s28, %s3728_s6  ;;  %p3734_p3 = scmp.lt.s32.totalorder %s3728_s6, %s3728_s6 }
  0x27   :  { %p3735_p4 = por %p3734_p3, %p3733_p2 }
  0x29   :  { %p3736_p5 = pnand %p3735_p4, %p3729_p1 }
  0x2b   :  { %3739 = shalt.err (!%p3736_p5)
}
  0x2c   :  { %127 = dma.hbm_to_vmem [thread:$0]  %s4779_s11, 2048, %s122_s28, [#allocation19], %s3852_s18, %s3852_s18, %s3853_s19  }
  0x2d   :  { %s3856_s17 = smov [#allocation7]   ;;  %s3857_s21 = smov [#allocation11]  }
  0x2e   :  { %s31_s20 = sshll.u32 %s3856_s17, 4  ;;  %s57_s22 = sshll.u32 %s3857_s21, 4  ;;  %s32_s20 = int_to_ptr.vmem [resolvable:$true] %s31_s20  ;;  %s58_s22 = int_to_ptr.vmem [resolvable:$true] %s57_s22 }
  0x2f   :  { %s3748_s8 = scalar_lea.vmem %s32_s20, 2048  ;;  %p3753_p7 = scmp.lt.s32.totalorder %s32_s20, %s32_s20 }
  0x30   :  { %p3749_p6 = scmp.ne.s32.totalorder %s32_s20, %s3748_s8  ;;  %p3754_p8 = scmp.lt.s32.totalorder %s3748_s8, %s3748_s8 }
  0x32   :  { %p3755_p9 = por %p3754_p8, %p3753_p7 }
  0x34   :  { %p3756_p10 = pnand %p3755_p9, %p3749_p6 }
  0x36   :  { %3759 = shalt.err (!%p3756_p10)
}
  0x37   :  { %37 = dma.hbm_to_vmem [thread:$0]  %s4769_s1, 2048, %s32_s20, [#allocation8], %s3852_s18, %s3852_s18, %s3853_s19  }
  0x38   :  { %s3768_s11 = scalar_lea.vmem %s58_s22, 2048  ;;  %p3773_p12 = scmp.lt.s32.totalorder %s58_s22, %s58_s22 }
  0x39   :  { %p3769_p11 = scmp.ne.s32.totalorder %s58_s22, %s3768_s11  ;;  %p3774_p13 = scmp.lt.s32.totalorder %s3768_s11, %s3768_s11 }
  0x3b   :  { %p3775_p0 = por %p3774_p13, %p3773_p12 }
  0x3d   :  { %p3776_p1 = pnand %p3775_p0, %p3769_p11 }
  0x3f   :  { %3779 = shalt.err (!%p3776_p1)
}
  0x40   :  { %63 = dma.hbm_to_vmem [thread:$0]  %s4772_s4, 2048, %s58_s22, [#allocation10], %s3852_s18, %s3852_s18, %s3853_s19  }
  0x41   :  { %s3858_s27 = smov [#allocation14]   ;;  %s3859_s3 = smov [#allocation17]  }
  0x42   :  { %s83_s28 = sshll.u32 %s3858_s27, 4  ;;  %s109_s29 = sshll.u32 %s3859_s3, 4  ;;  %s84_s28 = int_to_ptr.vmem [resolvable:$true] %s83_s28  ;;  %s110_s29 = int_to_ptr.vmem [resolvable:$true] %s109_s29 }
  0x43   :  { %s3788_s1 = scalar_lea.vmem %s84_s28, 2048  ;;  %p3793_p3 = scmp.lt.s32.totalorder %s84_s28, %s84_s28 }
  0x44   :  { %p3789_p2 = scmp.ne.s32.totalorder %s84_s28, %s3788_s1  ;;  %p3794_p4 = scmp.lt.s32.totalorder %s3788_s1, %s3788_s1 }
  0x46   :  { %p3795_p5 = por %p3794_p4, %p3793_p3 }
  0x48   :  { %p3796_p6 = pnand %p3795_p5, %p3789_p2 }
  0x4a   :  { %3799 = shalt.err (!%p3796_p6)
}
  0x4b   :  { %89 = dma.hbm_to_vmem [thread:$0]  %s4775_s7, 2048, %s84_s28, [#allocation13], %s3852_s18, %s3852_s18, %s3853_s19  }
  0x4c   :  { %s3808_s4 = scalar_lea.vmem %s110_s29, 2048  ;;  %p3813_p8 = scmp.lt.s32.totalorder %s110_s29, %s110_s29 }
  0x4d   :  { %p3809_p7 = scmp.ne.s32.totalorder %s110_s29, %s3808_s4  ;;  %p3814_p9 = scmp.lt.s32.totalorder %s3808_s4, %s3808_s4 }
  0x4f   :  { %p3815_p10 = por %p3814_p9, %p3813_p8 }
  0x51   :  { %p3816_p11 = pnand %p3815_p10, %p3809_p7 }
  0x53   :  { %3819 = shalt.err (!%p3816_p11)
}
  0x54   :  { %115 = dma.hbm_to_vmem [thread:$0]  %s4778_s10, 2048, %s110_s29, [#allocation16], %s3852_s18, %s3852_s18, %s3853_s19  }
  0x55   :  { %s3860_s17 = smov [#allocation20]  }
  0x56   :  { %s133_s20 = sshll.u32 %s3860_s17, 4  ;;  %s134_s20 = int_to_ptr.vmem [resolvable:$true] %s133_s20 }
  0x57   :  { %s3828_s21 = scalar_lea.vmem %s134_s20, 2048  ;;  %p3833_p13 = scmp.lt.s32.totalorder %s134_s20, %s134_s20 }
  0x58   :  { %p3829_p12 = scmp.ne.s32.totalorder %s134_s20, %s3828_s21  ;;  %p3834_p0 = scmp.lt.s32.totalorder %s3828_s21, %s3828_s21 }
  0x5a   :  { %p3835_p1 = por %p3834_p0, %p3833_p13 }
  0x5c   :  { %p3836_p2 = pnand %p3835_p1, %p3829_p12 }
  0x5e   :  { %3839 = shalt.err (!%p3836_p2)
}
  0x5f   :  { %139 = dma.hbm_to_vmem [thread:$0]  %s4780_s12, 2048, %s134_s20, [#allocation19], %s3852_s18, %s3852_s18, %s3853_s19  }
  0x60   :  { %3840 = dma.done.wait [#allocation8], 2048  }
  0x61   :  { %3841 = vsyncadd [#allocation8], 4294965248 }
  0x62   :  { %3842 = dma.done.wait [#allocation10], 4096  }
  0x63   :  { %3843 = vsyncadd [#allocation10], 4294963200 }
  0x64   :  { %3844 = dma.done.wait [#allocation13], 4096  }
  0x65   :  { %3845 = vsyncadd [#allocation13], 4294963200 }
  0x66   :  { %3846 = dma.done.wait [#allocation16], 4096  }
  0x67   :  { %3847 = vsyncadd [#allocation16], 4294963200 }
  0x68   :  { %3848 = dma.done.wait [#allocation19], 4096  }
  0x69   :  { %3849 = vsyncadd [#allocation19], 4294963200  ;;  %v192_v0 = vld [vmem:[#allocation7 + $0x78] sm:$0xff]  ;;  %v191_v1 = vld [vmem:[#allocation7 + $0x70] sm:$0xff]  ;;  %v3861_v56 = vmov 0.0   ;;  %vm3862_vm0 = vmmov 0  }
  0x6a   :  { %2765 = vmatprep.subr.mxu0 %v192_v0  ;;  %v190_v2 = vld [vmem:[#allocation7 + $0x68] sm:$0xff]  ;;  %v189_v3 = vld [vmem:[#allocation7 + $0x60] sm:$0xff]  ;;  %v188_v5 = vld [vmem:[#allocation7 + $0x58] sm:$0xff] }
  0x6b   :  { %2766 = vmatpush3.msra.mxu0 %v192_v0  ;;  %v169_v4 = vld [vmem:[%s4768_s0] sm:$0xff]  ;;  %v187_v6 = vld [vmem:[#allocation7 + $0x50] sm:$0xff]  ;;  %v376_v7 = vld [vmem:[#allocation11 + $0x78] sm:$0xff] }
  0x6c   :  { %2767 = vmatprep.subr.mxu0 %v191_v1  ;;  %2797 = vmatprep.mubr.f32.mxu0 %v169_v4  ;;  %v186_v8 = vld [vmem:[#allocation7 + $0x48] sm:$0xff]  ;;  %v375_v9 = vld [vmem:[#allocation11 + $0x70] sm:$0xff]  ;;  %v185_v11 = vld [vmem:[#allocation7 + $0x40] sm:$0xff] }
  0x6d   :  { %2768 = vmatpush3.msra.mxu0 %v191_v1  ;;  %2809 = vmatprep.subr.mxu1 %v376_v7  ;;  %v374_v10 = vld [vmem:[#allocation11 + $0x68] sm:$0xff]  ;;  %v373_v12 = vld [vmem:[#allocation11 + $0x60] sm:$0xff]  ;;  %v184_v13 = vld [vmem:[#allocation7 + $0x38] sm:$0xff] }
  0x6e   :  { %2769 = vmatprep.subr.mxu0 %v190_v2  ;;  %2810 = vmatpush3.msra.mxu1 %v376_v7  ;;  %v372_v14 = vld [vmem:[#allocation11 + $0x58] sm:$0xff]  ;;  %v183_v15 = vld [vmem:[#allocation7 + $0x30] sm:$0xff]  ;;  %v182_v17 = vld [vmem:[#allocation7 + $0x28] sm:$0xff] }
  0x6f   :  { %2770 = vmatpush3.msra.mxu0 %v190_v2  ;;  %2811 = vmatprep.subr.mxu1 %v375_v9  ;;  %v371_v16 = vld [vmem:[#allocation11 + $0x50] sm:$0xff]  ;;  %v370_v18 = vld [vmem:[#allocation11 + $0x48] sm:$0xff]  ;;  %v181_v19 = vld [vmem:[#allocation7 + $0x20] sm:$0xff] }
  0x70   :  { %2771 = vmatprep.subr.mxu0 %v189_v3  ;;  %2812 = vmatpush3.msra.mxu1 %v375_v9  ;;  %v180_v20 = vld [vmem:[#allocation7 + $0x18] sm:$0xff]  ;;  %v179_v21 = vld [vmem:[#allocation7 + $0x10] sm:$0xff]  ;;  %v178_v22 = vld [vmem:[#allocation7 + $0x8] sm:$0xff] }
  0x71   :  { %2772 = vmatpush3.msra.mxu0 %v189_v3  ;;  %2813 = vmatprep.subr.mxu1 %v374_v10  ;;  %v177_v23 = vld [vmem:[#allocation7] sm:$0xff]  ;;  %v170_v24 = vld [vmem:[%s4768_s0 + $0x8] sm:$0xff]  ;;  %v352_v25 = vld [vmem:[#allocation9 + $0x78] sm:$0xff] }
  0x72   :  { %2773 = vmatprep.subr.mxu0 %v188_v5  ;;  %2814 = vmatpush3.msra.mxu1 %v374_v10  ;;  %v171_v26 = vld [vmem:[%s4768_s0 + $0x10] sm:$0xff]  ;;  %v172_v28 = vld [vmem:[%s4768_s0 + $0x18] sm:$0xff]  ;;  %v350_v29 = vld [vmem:[#allocation9 + $0x68] sm:$0xff] }
  0x73   :  { %2774 = vmatpush3.msra.mxu0 %v188_v5  ;;  %2815 = vmatprep.subr.mxu1 %v373_v12  ;;  %v351_v27 = vld [vmem:[#allocation9 + $0x70] sm:$0xff]  ;;  %v173_v30 = vld [vmem:[%s4768_s0 + $0x20] sm:$0xff]  ;;  %v174_v32 = vld [vmem:[%s4768_s0 + $0x28] sm:$0xff] }
  0x74   :  { %2775 = vmatprep.subr.mxu0 %v187_v6  ;;  %2816 = vmatpush3.msra.mxu1 %v373_v12  ;;  %v349_v31 = vld [vmem:[#allocation9 + $0x60] sm:$0xff]  ;;  %v348_v33 = vld [vmem:[#allocation9 + $0x58] sm:$0xff]  ;;  %v175_v34 = vld [vmem:[%s4768_s0 + $0x30] sm:$0xff] }
  0x75   :  { %2776 = vmatpush3.msra.mxu0 %v187_v6  ;;  %2817 = vmatprep.subr.mxu1 %v372_v14  ;;  %v347_v35 = vld [vmem:[#allocation9 + $0x50] sm:$0xff]  ;;  %v176_v36 = vld [vmem:[%s4768_s0 + $0x38] sm:$0xff]  ;;  %v346_v37 = vld [vmem:[#allocation9 + $0x48] sm:$0xff] }
  0x76   :  { %2777 = vmatprep.subr.mxu0 %v186_v8  ;;  %2818 = vmatpush3.msra.mxu1 %v372_v14  ;;  %v345_v38 = vld [vmem:[#allocation9 + $0x40] sm:$0xff]  ;;  %v344_v39 = vld [vmem:[#allocation9 + $0x38] sm:$0xff]  ;;  %v343_v40 = vld [vmem:[#allocation9 + $0x30] sm:$0xff] }
  0x77   :  { %2778 = vmatpush3.msra.mxu0 %v186_v8  ;;  %2819 = vmatprep.subr.mxu1 %v371_v16  ;;  %v342_v41 = vld [vmem:[#allocation9 + $0x28] sm:$0xff]  ;;  %v341_v42 = vld [vmem:[#allocation9 + $0x20] sm:$0xff]  ;;  %v340_v44 = vld [vmem:[#allocation9 + $0x18] sm:$0xff] }
  0x78   :  { %2779 = vmatprep.subr.mxu0 %v185_v11  ;;  %2820 = vmatpush3.msra.mxu1 %v371_v16  ;;  %v369_v43 = vld [vmem:[#allocation11 + $0x40] sm:$0xff]  ;;  %v368_v45 = vld [vmem:[#allocation11 + $0x38] sm:$0xff]  ;;  %v339_v46 = vld [vmem:[#allocation9 + $0x10] sm:$0xff] }
  0x79   :  { %2780 = vmatpush3.msra.mxu0 %v185_v11  ;;  %2821 = vmatprep.subr.mxu1 %v370_v18  ;;  %v367_v47 = vld [vmem:[#allocation11 + $0x30] sm:$0xff]  ;;  %v338_v48 = vld [vmem:[#allocation9 + $0x8] sm:$0xff]  ;;  %v337_v50 = vld [vmem:[#allocation9] sm:$0xff] }
  0x7a   :  { %2781 = vmatprep.subr.mxu0 %v184_v13  ;;  %2822 = vmatpush3.msra.mxu1 %v370_v18  ;;  %v366_v49 = vld [vmem:[#allocation11 + $0x28] sm:$0xff]  ;;  %v365_v51 = vld [vmem:[#allocation11 + $0x20] sm:$0xff]  ;;  %v364_v52 = vld [vmem:[#allocation11 + $0x18] sm:$0xff] }
  0x7b   :  { %2782 = vmatpush3.msra.mxu0 %v184_v13  ;;  %2823 = vmatprep.subr.mxu1 %v369_v43  ;;  %v363_v53 = vld [vmem:[#allocation11 + $0x10] sm:$0xff]  ;;  %v362_v54 = vld [vmem:[#allocation11 + $0x8] sm:$0xff]  ;;  %v361_v55 = vld [vmem:[#allocation11] sm:$0xff] }
  0x7c   :  { %2783 = vmatprep.subr.mxu0 %v183_v15  ;;  %2824 = vmatpush3.msra.mxu1 %v369_v43  ;;  %v2335_v57 = vld [vmem:[%s4770_s2] ss:$0 sm:$0xff]  ;;  %v4029_v5 = vld [vmem:[#allocation12 + $0x78] sm:$0xff]  ;;  %v4032_v10 = vld [vmem:[#allocation12 + $0x70] sm:$0xff] }
  0x7d   :  { %2784 = vmatpush3.msra.mxu0 %v183_v15  ;;  %2825 = vmatprep.subr.mxu1 %v368_v45  ;;  %v4036_v13 = vld [vmem:[#allocation12 + $0x68] sm:$0xff]  ;;  %v4040_v18 = vld [vmem:[#allocation12 + $0x60] sm:$0xff] }
  0x7e   :  { %2785 = vmatprep.subr.mxu0 %v182_v17  ;;  %2826 = vmatpush3.msra.mxu1 %v368_v45 }
  0x7f   :  { %2786 = vmatpush3.msra.mxu0 %v182_v17  ;;  %2827 = vmatprep.subr.mxu1 %v367_v47 }
  0x80   :  { %2787 = vmatprep.subr.mxu0 %v181_v19  ;;  %2828 = vmatpush3.msra.mxu1 %v367_v47 }
  0x81   :  { %2788 = vmatpush3.msra.mxu0 %v181_v19  ;;  %2829 = vmatprep.subr.mxu1 %v366_v49 }
  0x82   :  { %2789 = vmatprep.subr.mxu0 %v180_v20  ;;  %2830 = vmatpush3.msra.mxu1 %v366_v49 }
  0x83   :  { %2790 = vmatpush3.msra.mxu0 %v180_v20  ;;  %2831 = vmatprep.subr.mxu1 %v365_v51 }
  0x84   :  { %2791 = vmatprep.subr.mxu0 %v179_v21  ;;  %2832 = vmatpush3.msra.mxu1 %v365_v51 }
  0x85   :  { %2792 = vmatpush3.msra.mxu0 %v179_v21  ;;  %2833 = vmatprep.subr.mxu1 %v364_v52  ;;  %v4044_v21 = vld [vmem:[#allocation12 + $0x58] sm:$0xff] }
  0x86   :  { %2793 = vmatprep.subr.mxu0 %v178_v22  ;;  %2834 = vmatpush3.msra.mxu1 %v364_v52 }
  0x87   :  { %2794 = vmatpush3.msra.mxu0 %v178_v22  ;;  %2835 = vmatprep.subr.mxu1 %v363_v53 }
  0x88   :  { %2795 = vmatprep.subr.mxu0 %v177_v23  ;;  %2836 = vmatpush3.msra.mxu1 %v363_v53 }
  0x89   :  { %2796 = vmatpush3.msra.mxu0 %v177_v23  ;;  %2837 = vmatprep.subr.mxu1 %v362_v54  ;;  %v4051_v23 = vld [vmem:[#allocation12 + $0x50] sm:$0xff] }
  0x8a   :  { %2798 = vmatmul.mubr.f32.vlgmr.msra.gmra.mxu0 %v170_v24  ;;  %2853 = vmatprep.subr.mxu0 %v352_v25  ;;  %v4058_v24 = vld [vmem:[#allocation12 + $0x48] sm:$0xff] }
  0x8b   :  { %2800 = vmatprep.mubr.f32.mxu0 %v171_v26  ;;  %2854 = vmatpush3.msra.mxu0 %v352_v25  ;;  %v4066_v25 = vld [vmem:[#allocation12 + $0x40] sm:$0xff]  ;;  %v4078_v26 = vld [vmem:[#allocation12 + $0x38] sm:$0xff] }
  0x8c   :  { %2855 = vmatprep.subr.mxu0 %v351_v27  ;;  %2838 = vmatpush3.msra.mxu1 %v362_v54 }
  0x8d   :  { %2856 = vmatpush3.msra.mxu0 %v351_v27  ;;  %2839 = vmatprep.subr.mxu1 %v361_v55  ;;  %v4084_v27 = vld [vmem:[#allocation12 + $0x30] sm:$0xff] }
  0x8e   :  { %2801 = vmatmul.mubr.f32.gmra.mxu0 %v172_v28  ;;  %2857 = vmatprep.subr.mxu0 %v350_v29  ;;  %v4090_v28 = vld [vmem:[#allocation12 + $0x28] sm:$0xff] }
  0x8f   :  { %2803 = vmatprep.mubr.f32.mxu0 %v173_v30  ;;  %2858 = vmatpush3.msra.mxu0 %v350_v29  ;;  %v4096_v29 = vld [vmem:[#allocation12 + $0x20] sm:$0xff]  ;;  %v4102_v30 = vld [vmem:[#allocation12 + $0x18] sm:$0xff] }
  0x90   :  { %2859 = vmatprep.subr.mxu0 %v349_v31  ;;  %2840 = vmatpush3.msra.mxu1 %v361_v55 }
  0x91   :  { %2860 = vmatpush3.msra.mxu0 %v349_v31  ;;  %2897 = vmatprep.subr.mxu1 %v3861_v56  ;;  %v4108_v31 = vld [vmem:[#allocation12 + $0x10] sm:$0xff] }
  0x92   :  { %2804 = vmatmul.mubr.f32.gmra.mxu0 %v174_v32  ;;  %2861 = vmatprep.subr.mxu0 %v348_v33  ;;  %v4114_v32 = vld [vmem:[#allocation12 + $0x8] sm:$0xff] }
  0x93   :  { %2806 = vmatprep.mubr.f32.mxu0 %v175_v34  ;;  %2862 = vmatpush3.msra.mxu0 %v348_v33  ;;  %v4120_v33 = vld [vmem:[#allocation12] sm:$0xff] }
  0x94   :  { %2863 = vmatprep.subr.mxu0 %v347_v35 }
  0x95   :  { %2864 = vmatpush3.msra.mxu0 %v347_v35 }
  0x96   :  { %2807 = vmatmul.mubr.f32.gmra.mxu0 %v176_v36  ;;  %2865 = vmatprep.subr.mxu0 %v346_v37 }
  0x97   :  { %2866 = vmatpush3.msra.mxu0 %v346_v37 }
  0x98   :  { %2867 = vmatprep.subr.mxu0 %v345_v38 }
  0x99   :  { %2868 = vmatpush3.msra.mxu0 %v345_v38 }
  0x9a   :  { %2869 = vmatprep.subr.mxu0 %v344_v39 }
  0x9b   :  { %2870 = vmatpush3.msra.mxu0 %v344_v39  ;;  %v2336_v39 = vld [vmem:[%s4773_s5] ss:$0 sm:$0xff] }
  0x9c   :  { %2871 = vmatprep.subr.mxu0 %v343_v40 }
  0x9d   :  { %2872 = vmatpush3.msra.mxu0 %v343_v40 }
  0x9e   :  { %2873 = vmatprep.subr.mxu0 %v342_v41 }
  0x9f   :  { %2874 = vmatpush3.msra.mxu0 %v342_v41 }
  0xa0   :  { %2875 = vmatprep.subr.mxu0 %v341_v42 }
  0xa1   :  { %2876 = vmatpush3.msra.mxu0 %v341_v42 }
  0xa2   :  { %2877 = vmatprep.subr.mxu0 %v340_v44 }
  0xa3   :  { %2878 = vmatpush3.msra.mxu0 %v340_v44 }
  0xa4   :  { %2879 = vmatprep.subr.mxu0 %v339_v46 }
  0xa5   :  { %2880 = vmatpush3.msra.mxu0 %v339_v46 }
  0xa6   :  { %2881 = vmatprep.subr.mxu0 %v338_v48 }
  0xa7   :  { %2882 = vmatpush3.msra.mxu0 %v338_v48 }
  0xa8   :  { %2883 = vmatprep.subr.mxu0 %v337_v50 }
  0xa9   :  { %2884 = vmatpush3.msra.mxu0 %v337_v50 }
  0xaa   :  { %2932 = vmatprep.subr.mxu0 %v3861_v56 }
 0x14a   :  { %v2799_v58 = vpop.f32.mrf.mxu0 }
 0x14b   :  { %v4021_v59 = vadd.f32 %v2799_v58, %v2335_v57 }
 0x14c   :  { %v266_v60 = vpop.f32.mrf.mxu0 }
 0x14d   :  { %v4023_v61 = vadd.f32 %v2335_v57, %v266_v60  ;;  %v306_v0 = vmax.f32 %v4021_v59, 0.0 }
 0x14e   :  { %v2802_v62 = vpop.f32.mrf.mxu0 }
 0x14f   :  { %v305_v63 = vmax.f32 %v4023_v61, 0.0  ;;  %v282_v1 = vadd.f32 %v2802_v62, %v2335_v57 }
 0x150   :  { %v276_v2 = vpop.f32.mrf.mxu0 }
 0x151   :  { %v277_v3 = vadd.f32 %v2335_v57, %v276_v2  ;;  %2885 = vmatprep.mubr.f32.mxu0 %v305_v63  ;;  %v308_v7 = vmax.f32 %v282_v1, 0.0 }
 0x152   :  { %v2805_v4 = vpop.f32.mrf.mxu0  ;;  %2886 = vmatmul.mubr.f32.vlgmr.msra.gmra.mxu0 %v306_v0 }
 0x153   :  { %v307_v6 = vmax.f32 %v277_v3, 0.0  ;;  %2933 = vmatpush3.msra.mxu0 %v4029_v5  ;;  %v292_v8 = vadd.f32 %v2805_v4, %v2335_v57 }
 0x154   :  { %v286_v9 = vpop.f32.mrf.mxu0  ;;  %2934 = vmatprep.subr.mxu0 %v3861_v56 }
 0x155   :  { %v287_v11 = vadd.f32 %v2335_v57, %v286_v9  ;;  %2888 = vmatprep.mubr.f32.mxu0 %v307_v6  ;;  %2935 = vmatpush3.msra.mxu0 %v4032_v10  ;;  %v310_v16 = vmax.f32 %v292_v8, 0.0 }
 0x156   :  { %v2808_v12 = vpop.f32.mrf.mxu0  ;;  %2889 = vmatmul.mubr.f32.gmra.mxu0 %v308_v7  ;;  %2936 = vmatprep.subr.mxu0 %v3861_v56 }
 0x157   :  { %v309_v14 = vmax.f32 %v287_v11, 0.0  ;;  %v302_v15 = vadd.f32 %v2808_v12, %v2335_v57  ;;  %2937 = vmatpush3.msra.mxu0 %v4036_v13 }
 0x158   :  { %v296_v17 = vpop.f32.mrf.mxu0  ;;  %2938 = vmatprep.subr.mxu0 %v3861_v56 }
 0x159   :  { %v312_v19 = vmax.f32 %v302_v15, 0.0  ;;  %v297_v20 = vadd.f32 %v2335_v57, %v296_v17  ;;  %2891 = vmatprep.mubr.f32.mxu0 %v309_v14  ;;  %2939 = vmatpush3.msra.mxu0 %v4040_v18 }
 0x15a   :  { %2892 = vmatmul.mubr.f32.gmra.mxu0 %v310_v16  ;;  %2940 = vmatprep.subr.mxu0 %v3861_v56 }
 0x15b   :  { %v311_v22 = vmax.f32 %v297_v20, 0.0  ;;  %2841 = vmatprep.mubr.f32.mxu1 %v312_v19  ;;  %2941 = vmatpush3.msra.mxu0 %v4044_v21 }
 0x15c   :  { %2942 = vmatprep.subr.mxu0 %v3861_v56 }
 0x15d   :  { %2842 = vmatmul.mubr.f32.vlgmr.msra.gmra.mxu1 %v311_v22  ;;  %2894 = vmatprep.mubr.f32.mxu0 %v311_v22 }
 0x15e   :  { %2898 = vmatpush3.msra.mxu1 %v4029_v5  ;;  %2844 = vmatprep.mubr.f32.mxu1 %v310_v16 }
 0x15f   :  { %2895 = vmatmul.mubr.f32.gmra.mxu0 %v312_v19  ;;  %2899 = vmatprep.subr.mxu1 %v3861_v56 }
 0x160   :  { %2900 = vmatpush3.msra.mxu1 %v4032_v10  ;;  %2943 = vmatpush3.msra.mxu0 %v4051_v23 }
 0x161   :  { %2901 = vmatprep.subr.mxu1 %v3861_v56  ;;  %2845 = vmatmul.mubr.f32.gmra.mxu1 %v309_v14 }
 0x162   :  { %2902 = vmatpush3.msra.mxu1 %v4036_v13  ;;  %2847 = vmatprep.mubr.f32.mxu1 %v308_v7 }
 0x163   :  { %2903 = vmatprep.subr.mxu1 %v3861_v56  ;;  %2944 = vmatprep.subr.mxu0 %v3861_v56 }
 0x164   :  { %2904 = vmatpush3.msra.mxu1 %v4040_v18  ;;  %2945 = vmatpush3.msra.mxu0 %v4058_v24 }
 0x165   :  { %2905 = vmatprep.subr.mxu1 %v3861_v56  ;;  %2848 = vmatmul.mubr.f32.gmra.mxu1 %v307_v6 }
 0x166   :  { %2906 = vmatpush3.msra.mxu1 %v4044_v21  ;;  %2850 = vmatprep.mubr.f32.mxu1 %v306_v0 }
 0x167   :  { %2907 = vmatprep.subr.mxu1 %v3861_v56  ;;  %2946 = vmatprep.subr.mxu0 %v3861_v56 }
 0x168   :  { %2908 = vmatpush3.msra.mxu1 %v4051_v23  ;;  %2947 = vmatpush3.msra.mxu0 %v4066_v25 }
 0x169   :  { %2909 = vmatprep.subr.mxu1 %v3861_v56  ;;  %2851 = vmatmul.mubr.f32.gmra.mxu1 %v305_v63 }
 0x16a   :  { %2910 = vmatpush3.msra.mxu1 %v4058_v24  ;;  %2929 = vmatprep.mubr.msk.f32.mxu1 %vm3862_vm0, %v3861_v56 }
 0x16b   :  { %2911 = vmatprep.subr.mxu1 %v3861_v56  ;;  %2948 = vmatprep.subr.mxu0 %v3861_v56 }
 0x16c   :  { %2912 = vmatpush3.msra.mxu1 %v4066_v25  ;;  %2949 = vmatpush3.msra.mxu0 %v4078_v26 }
 0x16d   :  { %2913 = vmatprep.subr.mxu1 %v3861_v56  ;;  %2950 = vmatprep.subr.mxu0 %v3861_v56 }
 0x16e   :  { %2914 = vmatpush3.msra.mxu1 %v4078_v26  ;;  %2951 = vmatpush3.msra.mxu0 %v4084_v27 }
 0x16f   :  { %2915 = vmatprep.subr.mxu1 %v3861_v56  ;;  %2952 = vmatprep.subr.mxu0 %v3861_v56 }
 0x170   :  { %2916 = vmatpush3.msra.mxu1 %v4084_v27  ;;  %2953 = vmatpush3.msra.mxu0 %v4090_v28 }
 0x171   :  { %2917 = vmatprep.subr.mxu1 %v3861_v56  ;;  %2954 = vmatprep.subr.mxu0 %v3861_v56 }
 0x172   :  { %2918 = vmatpush3.msra.mxu1 %v4090_v28  ;;  %2955 = vmatpush3.msra.mxu0 %v4096_v29 }
 0x173   :  { %2919 = vmatprep.subr.mxu1 %v3861_v56  ;;  %2956 = vmatprep.subr.mxu0 %v3861_v56 }
 0x174   :  { %2920 = vmatpush3.msra.mxu1 %v4096_v29  ;;  %2957 = vmatpush3.msra.mxu0 %v4102_v30 }
 0x175   :  { %2921 = vmatprep.subr.mxu1 %v3861_v56  ;;  %2958 = vmatprep.subr.mxu0 %v3861_v56 }
 0x176   :  { %2922 = vmatpush3.msra.mxu1 %v4102_v30  ;;  %2959 = vmatpush3.msra.mxu0 %v4108_v31 }
 0x177   :  { %2923 = vmatprep.subr.mxu1 %v3861_v56  ;;  %2960 = vmatprep.subr.mxu0 %v3861_v56 }
 0x178   :  { %2924 = vmatpush3.msra.mxu1 %v4108_v31  ;;  %2961 = vmatpush3.msra.mxu0 %v4114_v32 }
 0x179   :  { %2925 = vmatprep.subr.mxu1 %v3861_v56  ;;  %2962 = vmatprep.subr.mxu0 %v3861_v56 }
 0x17a   :  { %2926 = vmatpush3.msra.mxu1 %v4114_v32  ;;  %2963 = vmatpush3.msra.mxu0 %v4120_v33 }
 0x17b   :  { %2927 = vmatprep.subr.mxu1 %v3861_v56  ;;  %2964 = vmatprep.mubr.msk.f32.mxu0 %vm3862_vm0, %v3861_v56 }
 0x17c   :  { %2928 = vmatpush3.msra.mxu1 %v4120_v33  ;;  %3002 = vmatprep.subr.mxu0 %v3861_v56 }
 0x17d   :  { %2930 = vmatmul.mubr.f32.vlgmr.msra.gmra.mxu1 %v3861_v56  ;;  %2967 = vmatprep.subr.mxu1 %v3861_v56 }
 0x17e   :  { %2968 = vmatpush3.msra.mxu1 %v4029_v5  ;;  %2999 = vmatprep.mubr.msk.f32.mxu1 %vm3862_vm0, %v3861_v56 }
 0x17f   :  { %2969 = vmatprep.subr.mxu1 %v3861_v56 }
 0x180   :  { %2970 = vmatpush3.msra.mxu1 %v4032_v10 }
 0x181   :  { %2971 = vmatprep.subr.mxu1 %v3861_v56 }
 0x182   :  { %2972 = vmatpush3.msra.mxu1 %v4036_v13 }
 0x183   :  { %2973 = vmatprep.subr.mxu1 %v3861_v56 }
 0x184   :  { %2974 = vmatpush3.msra.mxu1 %v4040_v18 }
 0x185   :  { %2975 = vmatprep.subr.mxu1 %v3861_v56 }
 0x186   :  { %2976 = vmatpush3.msra.mxu1 %v4044_v21 }
 0x187   :  { %2977 = vmatprep.subr.mxu1 %v3861_v56 }
 0x188   :  { %2978 = vmatpush3.msra.mxu1 %v4051_v23 }
 0x189   :  { %2979 = vmatprep.subr.mxu1 %v3861_v56 }
 0x18a   :  { %2980 = vmatpush3.msra.mxu1 %v4058_v24 }
 0x18b   :  { %2981 = vmatprep.subr.mxu1 %v3861_v56 }
 0x18c   :  { %2982 = vmatpush3.msra.mxu1 %v4066_v25 }
 0x18d   :  { %2983 = vmatprep.subr.mxu1 %v3861_v56 }
 0x18e   :  { %2984 = vmatpush3.msra.mxu1 %v4078_v26 }
 0x18f   :  { %2985 = vmatprep.subr.mxu1 %v3861_v56 }
 0x190   :  { %2986 = vmatpush3.msra.mxu1 %v4084_v27 }
 0x191   :  { %2987 = vmatprep.subr.mxu1 %v3861_v56 }
 0x192   :  { %2988 = vmatpush3.msra.mxu1 %v4090_v28 }
 0x193   :  { %2989 = vmatprep.subr.mxu1 %v3861_v56 }
 0x194   :  { %2990 = vmatpush3.msra.mxu1 %v4096_v29 }
 0x195   :  { %2991 = vmatprep.subr.mxu1 %v3861_v56 }
 0x196   :  { %2992 = vmatpush3.msra.mxu1 %v4102_v30 }
 0x197   :  { %2993 = vmatprep.subr.mxu1 %v3861_v56 }
 0x198   :  { %2994 = vmatpush3.msra.mxu1 %v4108_v31 }
 0x199   :  { %2995 = vmatprep.subr.mxu1 %v3861_v56 }
 0x19a   :  { %2996 = vmatpush3.msra.mxu1 %v4114_v32 }
 0x19b   :  { %2997 = vmatprep.subr.mxu1 %v3861_v56 }
 0x19c   :  { %2998 = vmatpush3.msra.mxu1 %v4120_v33 }
 0x19d   :  { %3037 = vmatprep.subr.mxu1 %v3861_v56 }
 0x212   :  { %v2887_v34 = vpop.f32.mrf.mxu0 }
 0x214   :  { %v548_v35 = vpop.f32.mrf.mxu0 }
 0x216   :  { %v2890_v36 = vpop.f32.mrf.mxu0 }
 0x218   :  { %v558_v37 = vpop.f32.mrf.mxu0 }
 0x21a   :  { %v2893_v41 = vpop.f32.mrf.mxu0 }
 0x21c   :  { %v568_v46 = vpop.f32.mrf.mxu0 }
 0x21d   :  { %v2843_v38 = vpop.f32.mrf.mxu1 }
 0x21e   :  { %v554_v40 = vadd.f32 %v2887_v34, %v2843_v38 }
 0x21f   :  { %v443_v42 = vpop.f32.mrf.mxu1  ;;  %v2896_v53 = vpop.f32.mrf.mxu0 }
 0x220   :  { %v4169_v43 = vadd.f32 %v2336_v39, %v554_v40  ;;  %v549_v2 = vadd.f32 %v548_v35, %v443_v42  ;;  %v1268_v42 = vld [vmem:[#allocation14 + $0x68] sm:$0xff] }
 0x221   :  { %v2846_v44 = vpop.f32.mrf.mxu1  ;;  %v578_v61 = vpop.f32.mrf.mxu0 }
 0x222   :  { %v564_v45 = vadd.f32 %v2890_v36, %v2846_v44  ;;  %v594_v3 = vadd.f32 %v2336_v39, %v549_v2  ;;  %v1266_v44 = vld [vmem:[#allocation14 + $0x58] sm:$0xff] }
 0x223   :  { %v453_v47 = vpop.f32.mrf.mxu1  ;;  %v4387_v2 = vld [vmem:[#allocation17 + $0x78] sm:$0xff] }
 0x224   :  { %v559_v48 = vadd.f32 %v558_v37, %v453_v47  ;;  %v4171_v49 = vadd.f32 %v2336_v39, %v564_v45  ;;  %v1265_v45 = vld [vmem:[#allocation14 + $0x50] sm:$0xff]  ;;  %v1263_v47 = vld [vmem:[#allocation14 + $0x40] sm:$0xff] }
 0x225   :  { %v2849_v50 = vpop.f32.mrf.mxu1 }
 0x226   :  { %v574_v51 = vadd.f32 %v2893_v41, %v2849_v50  ;;  %v4173_v52 = vadd.f32 %v2336_v39, %v559_v48  ;;  %v1269_v41 = vld [vmem:[#allocation14 + $0x70] sm:$0xff]  ;;  %v1262_v48 = vld [vmem:[#allocation14 + $0x38] sm:$0xff]  ;;  %v1260_v50 = vld [vmem:[#allocation14 + $0x28] sm:$0xff] }
 0x227   :  { %v463_v54 = vpop.f32.mrf.mxu1 }
 0x228   :  { %v569_v55 = vadd.f32 %v568_v46, %v463_v54  ;;  %v4175_v57 = vadd.f32 %v2336_v39, %v574_v51  ;;  %v1264_v46 = vld [vmem:[#allocation14 + $0x48] sm:$0xff]  ;;  %v1259_v51 = vld [vmem:[#allocation14 + $0x20] sm:$0xff] }
 0x229   :  { %v2852_v58 = vpop.f32.mrf.mxu1  ;;  %v1256_v54 = vld [vmem:[#allocation14 + $0x8] sm:$0xff] }
 0x22a   :  { %v584_v59 = vadd.f32 %v2896_v53, %v2852_v58  ;;  %v4177_v60 = vadd.f32 %v2336_v39, %v569_v55  ;;  %v1257_v53 = vld [vmem:[#allocation14 + $0x10] sm:$0xff]  ;;  %v1255_v55 = vld [vmem:[#allocation14] sm:$0xff] }
 0x22b   :  { %v473_v62 = vpop.f32.mrf.mxu1  ;;  %v1285_v58 = vld [vmem:[#allocation15 + $0x30] sm:$0xff] }
 0x22c   :  { %v579_v63 = vadd.f32 %v578_v61, %v473_v62  ;;  %v4179_v0 = vadd.f32 %v2336_v39, %v584_v59  ;;  %v1284_v59 = vld [vmem:[#allocation15 + $0x28] sm:$0xff]  ;;  %v1282_v61 = vld [vmem:[#allocation15 + $0x18] sm:$0xff]  ;;  %v1281_v62 = vld [vmem:[#allocation15 + $0x10] sm:$0xff] }
 0x22e   :  { %v4181_v1 = vadd.f32 %v2336_v39, %v579_v63  ;;  %v1280_v63 = vld [vmem:[#allocation15 + $0x8] sm:$0xff] }
 0x23d   :  { %v693_v4 = vpop.f32.mrf.mxu1 }
 0x23e   :  { %v697_v6 = vadd.f32 %v693_v4, %v594_v3  ;;  %v4390_v3 = vld [vmem:[#allocation17 + $0x70] sm:$0xff]  ;;  %v4394_v4 = vld [vmem:[#allocation17 + $0x68] sm:$0xff] }
 0x23f   :  { %v2931_v7 = vpop.f32.mrf.mxu1 }
 0x240   :  { %3628 = vtanh.f32 %v697_v6  ;;  %v4398_v6 = vld [vmem:[#allocation17 + $0x60] sm:$0xff]  ;;  %v4402_v7 = vld [vmem:[#allocation17 + $0x58] sm:$0xff] }
 0x24d   :  { %v4183_v8 = vpop.eup %3628 }
 0x24e   :  { %2965 = vmatmul.mubr.f32.vlgmr.msra.gmra.mxu0 %v4183_v8 }
 0x24f   :  { %3003 = vmatpush3.msra.mxu0 %v4029_v5  ;;  %3034 = vmatprep.mubr.msk.f32.mxu0 %vm3862_vm0, %v3861_v56 }
 0x250   :  { %3004 = vmatprep.subr.mxu0 %v3861_v56 }
 0x251   :  { %3005 = vmatpush3.msra.mxu0 %v4032_v10 }
 0x252   :  { %3006 = vmatprep.subr.mxu0 %v3861_v56 }
 0x253   :  { %3007 = vmatpush3.msra.mxu0 %v4036_v13 }
 0x254   :  { %3008 = vmatprep.subr.mxu0 %v3861_v56 }
 0x255   :  { %3009 = vmatpush3.msra.mxu0 %v4040_v18 }
 0x256   :  { %3010 = vmatprep.subr.mxu0 %v3861_v56 }
 0x257   :  { %3011 = vmatpush3.msra.mxu0 %v4044_v21 }
 0x258   :  { %3012 = vmatprep.subr.mxu0 %v3861_v56 }
 0x259   :  { %3013 = vmatpush3.msra.mxu0 %v4051_v23 }
 0x25a   :  { %3014 = vmatprep.subr.mxu0 %v3861_v56 }
 0x25b   :  { %3015 = vmatpush3.msra.mxu0 %v4058_v24 }
 0x25c   :  { %3016 = vmatprep.subr.mxu0 %v3861_v56 }
 0x25d   :  { %3017 = vmatpush3.msra.mxu0 %v4066_v25 }
 0x25e   :  { %3018 = vmatprep.subr.mxu0 %v3861_v56 }
 0x25f   :  { %3019 = vmatpush3.msra.mxu0 %v4078_v26 }
 0x260   :  { %3020 = vmatprep.subr.mxu0 %v3861_v56 }
 0x261   :  { %3021 = vmatpush3.msra.mxu0 %v4084_v27 }
 0x262   :  { %3022 = vmatprep.subr.mxu0 %v3861_v56 }
 0x263   :  { %3023 = vmatpush3.msra.mxu0 %v4090_v28 }
 0x264   :  { %3024 = vmatprep.subr.mxu0 %v3861_v56 }
 0x265   :  { %3025 = vmatpush3.msra.mxu0 %v4096_v29 }
 0x266   :  { %3026 = vmatprep.subr.mxu0 %v3861_v56 }
 0x267   :  { %3027 = vmatpush3.msra.mxu0 %v4102_v30 }
 0x268   :  { %3028 = vmatprep.subr.mxu0 %v3861_v56 }
 0x269   :  { %3029 = vmatpush3.msra.mxu0 %v4108_v31 }
 0x26a   :  { %3030 = vmatprep.subr.mxu0 %v3861_v56 }
 0x26b   :  { %3031 = vmatpush3.msra.mxu0 %v4114_v32 }
 0x26c   :  { %3032 = vmatprep.subr.mxu0 %v3861_v56 }
 0x26d   :  { %3033 = vmatpush3.msra.mxu0 %v4120_v33 }
 0x26e   :  { %3072 = vmatprep.subr.mxu0 %v3861_v56 }
 0x30e   :  { %v770_v9 = vpop.f32.mrf.mxu0 }
 0x30f   :  { %v774_v11 = vadd.f32 %v770_v9, %v4169_v43  ;;  %v1267_v43 = vld [vmem:[#allocation14 + $0x60] sm:$0xff]  ;;  %v4406_v9 = vld [vmem:[#allocation17 + $0x50] sm:$0xff] }
 0x310   :  { %v2966_v12 = vpop.f32.mrf.mxu0 }
 0x311   :  { %3630 = vtanh.f32 %v774_v11  ;;  %v4410_v11 = vld [vmem:[#allocation17 + $0x48] sm:$0xff]  ;;  %v4414_v12 = vld [vmem:[#allocation17 + $0x40] sm:$0xff] }
 0x31e   :  { %v4221_v14 = vpop.eup %3630 }
 0x31f   :  { %3000 = vmatmul.mubr.f32.vlgmr.msra.gmra.mxu1 %v4221_v14 }
 0x320   :  { %3038 = vmatpush3.msra.mxu1 %v4029_v5  ;;  %3069 = vmatprep.mubr.msk.f32.mxu1 %vm3862_vm0, %v3861_v56 }
 0x321   :  { %3039 = vmatprep.subr.mxu1 %v3861_v56 }
 0x322   :  { %3040 = vmatpush3.msra.mxu1 %v4032_v10 }
 0x323   :  { %3041 = vmatprep.subr.mxu1 %v3861_v56 }
 0x324   :  { %3042 = vmatpush3.msra.mxu1 %v4036_v13 }
 0x325   :  { %3043 = vmatprep.subr.mxu1 %v3861_v56 }
 0x326   :  { %3044 = vmatpush3.msra.mxu1 %v4040_v18 }
 0x327   :  { %3045 = vmatprep.subr.mxu1 %v3861_v56 }
 0x328   :  { %3046 = vmatpush3.msra.mxu1 %v4044_v21 }
 0x329   :  { %3047 = vmatprep.subr.mxu1 %v3861_v56 }
 0x32a   :  { %3048 = vmatpush3.msra.mxu1 %v4051_v23 }
 0x32b   :  { %3049 = vmatprep.subr.mxu1 %v3861_v56 }
 0x32c   :  { %3050 = vmatpush3.msra.mxu1 %v4058_v24 }
 0x32d   :  { %3051 = vmatprep.subr.mxu1 %v3861_v56 }
 0x32e   :  { %3052 = vmatpush3.msra.mxu1 %v4066_v25 }
 0x32f   :  { %3053 = vmatprep.subr.mxu1 %v3861_v56 }
 0x330   :  { %3054 = vmatpush3.msra.mxu1 %v4078_v26 }
 0x331   :  { %3055 = vmatprep.subr.mxu1 %v3861_v56 }
 0x332   :  { %3056 = vmatpush3.msra.mxu1 %v4084_v27 }
 0x333   :  { %3057 = vmatprep.subr.mxu1 %v3861_v56 }
 0x334   :  { %3058 = vmatpush3.msra.mxu1 %v4090_v28 }
 0x335   :  { %3059 = vmatprep.subr.mxu1 %v3861_v56 }
 0x336   :  { %3060 = vmatpush3.msra.mxu1 %v4096_v29 }
 0x337   :  { %3061 = vmatprep.subr.mxu1 %v3861_v56 }
 0x338   :  { %3062 = vmatpush3.msra.mxu1 %v4102_v30 }
 0x339   :  { %3063 = vmatprep.subr.mxu1 %v3861_v56 }
 0x33a   :  { %3064 = vmatpush3.msra.mxu1 %v4108_v31 }
 0x33b   :  { %3065 = vmatprep.subr.mxu1 %v3861_v56 }
 0x33c   :  { %3066 = vmatpush3.msra.mxu1 %v4114_v32 }
 0x33d   :  { %3067 = vmatprep.subr.mxu1 %v3861_v56 }
 0x33e   :  { %3068 = vmatpush3.msra.mxu1 %v4120_v33 }
 0x33f   :  { %3107 = vmatprep.subr.mxu1 %v3861_v56 }
 0x3df   :  { %v848_v15 = vpop.f32.mrf.mxu1 }
 0x3e0   :  { %v852_v16 = vadd.f32 %v848_v15, %v4173_v52  ;;  %v1258_v52 = vld [vmem:[#allocation14 + $0x18] sm:$0xff] }
 0x3e1   :  { %v3001_v17 = vpop.f32.mrf.mxu1  ;;  %v4418_v15 = vld [vmem:[#allocation17 + $0x38] sm:$0xff] }
 0x3e2   :  { %3632 = vtanh.f32 %v852_v16  ;;  %v4422_v16 = vld [vmem:[#allocation17 + $0x30] sm:$0xff]  ;;  %v4426_v17 = vld [vmem:[#allocation17 + $0x28] sm:$0xff] }
 0x3ef   :  { %v4259_v19 = vpop.eup %3632 }
 0x3f0   :  { %3035 = vmatmul.mubr.f32.vlgmr.msra.gmra.mxu0 %v4259_v19 }
 0x3f1   :  { %3073 = vmatpush3.msra.mxu0 %v4029_v5  ;;  %3104 = vmatprep.mubr.msk.f32.mxu0 %vm3862_vm0, %v3861_v56 }
 0x3f2   :  { %3074 = vmatprep.subr.mxu0 %v3861_v56 }
 0x3f3   :  { %3075 = vmatpush3.msra.mxu0 %v4032_v10 }
 0x3f4   :  { %3076 = vmatprep.subr.mxu0 %v3861_v56 }
 0x3f5   :  { %3077 = vmatpush3.msra.mxu0 %v4036_v13 }
 0x3f6   :  { %3078 = vmatprep.subr.mxu0 %v3861_v56 }
 0x3f7   :  { %3079 = vmatpush3.msra.mxu0 %v4040_v18 }
 0x3f8   :  { %3080 = vmatprep.subr.mxu0 %v3861_v56 }
 0x3f9   :  { %3081 = vmatpush3.msra.mxu0 %v4044_v21 }
 0x3fa   :  { %3082 = vmatprep.subr.mxu0 %v3861_v56 }
 0x3fb   :  { %3083 = vmatpush3.msra.mxu0 %v4051_v23 }
 0x3fc   :  { %3084 = vmatprep.subr.mxu0 %v3861_v56 }
 0x3fd   :  { %3085 = vmatpush3.msra.mxu0 %v4058_v24 }
 0x3fe   :  { %3086 = vmatprep.subr.mxu0 %v3861_v56 }
 0x3ff   :  { %3087 = vmatpush3.msra.mxu0 %v4066_v25 }
 0x400   :  { %3088 = vmatprep.subr.mxu0 %v3861_v56 }
 0x401   :  { %3089 = vmatpush3.msra.mxu0 %v4078_v26 }
 0x402   :  { %3090 = vmatprep.subr.mxu0 %v3861_v56 }
 0x403   :  { %3091 = vmatpush3.msra.mxu0 %v4084_v27 }
 0x404   :  { %3092 = vmatprep.subr.mxu0 %v3861_v56 }
 0x405   :  { %3093 = vmatpush3.msra.mxu0 %v4090_v28 }
 0x406   :  { %3094 = vmatprep.subr.mxu0 %v3861_v56 }
 0x407   :  { %3095 = vmatpush3.msra.mxu0 %v4096_v29 }
 0x408   :  { %3096 = vmatprep.subr.mxu0 %v3861_v56 }
 0x409   :  { %3097 = vmatpush3.msra.mxu0 %v4102_v30 }
 0x40a   :  { %3098 = vmatprep.subr.mxu0 %v3861_v56 }
 0x40b   :  { %3099 = vmatpush3.msra.mxu0 %v4108_v31 }
 0x40c   :  { %3100 = vmatprep.subr.mxu0 %v3861_v56 }
 0x40d   :  { %3101 = vmatpush3.msra.mxu0 %v4114_v32 }
 0x40e   :  { %3102 = vmatprep.subr.mxu0 %v3861_v56 }
 0x40f   :  { %3103 = vmatpush3.msra.mxu0 %v4120_v33 }
 0x410   :  { %3142 = vmatprep.subr.mxu0 %v3861_v56 }
 0x4b0   :  { %v926_v20 = vpop.f32.mrf.mxu0 }
 0x4b1   :  { %v930_v22 = vadd.f32 %v926_v20, %v4171_v49  ;;  %v1261_v49 = vld [vmem:[#allocation14 + $0x30] sm:$0xff]  ;;  %v4430_v20 = vld [vmem:[#allocation17 + $0x20] sm:$0xff] }
 0x4b2   :  { %v3036_v34 = vpop.f32.mrf.mxu0 }
 0x4b3   :  { %3634 = vtanh.f32 %v930_v22  ;;  %v4434_v22 = vld [vmem:[#allocation17 + $0x18] sm:$0xff]  ;;  %v4438_v34 = vld [vmem:[#allocation17 + $0x10] sm:$0xff] }
 0x4c0   :  { %v4297_v35 = vpop.eup %3634 }
 0x4c1   :  { %3070 = vmatmul.mubr.f32.vlgmr.msra.gmra.mxu1 %v4297_v35 }
 0x4c2   :  { %3108 = vmatpush3.msra.mxu1 %v4029_v5  ;;  %3139 = vmatprep.mubr.msk.f32.mxu1 %vm3862_vm0, %v3861_v56 }
 0x4c3   :  { %3109 = vmatprep.subr.mxu1 %v3861_v56 }
 0x4c4   :  { %3110 = vmatpush3.msra.mxu1 %v4032_v10 }
 0x4c5   :  { %3111 = vmatprep.subr.mxu1 %v3861_v56 }
 0x4c6   :  { %3112 = vmatpush3.msra.mxu1 %v4036_v13 }
 0x4c7   :  { %3113 = vmatprep.subr.mxu1 %v3861_v56 }
 0x4c8   :  { %3114 = vmatpush3.msra.mxu1 %v4040_v18 }
 0x4c9   :  { %3115 = vmatprep.subr.mxu1 %v3861_v56 }
 0x4ca   :  { %3116 = vmatpush3.msra.mxu1 %v4044_v21 }
 0x4cb   :  { %3117 = vmatprep.subr.mxu1 %v3861_v56 }
 0x4cc   :  { %3118 = vmatpush3.msra.mxu1 %v4051_v23 }
 0x4cd   :  { %3119 = vmatprep.subr.mxu1 %v3861_v56 }
 0x4ce   :  { %3120 = vmatpush3.msra.mxu1 %v4058_v24 }
 0x4cf   :  { %3121 = vmatprep.subr.mxu1 %v3861_v56 }
 0x4d0   :  { %3122 = vmatpush3.msra.mxu1 %v4066_v25 }
 0x4d1   :  { %3123 = vmatprep.subr.mxu1 %v3861_v56 }
 0x4d2   :  { %3124 = vmatpush3.msra.mxu1 %v4078_v26 }
 0x4d3   :  { %3125 = vmatprep.subr.mxu1 %v3861_v56 }
 0x4d4   :  { %3126 = vmatpush3.msra.mxu1 %v4084_v27 }
 0x4d5   :  { %3127 = vmatprep.subr.mxu1 %v3861_v56 }
 0x4d6   :  { %3128 = vmatpush3.msra.mxu1 %v4090_v28 }
 0x4d7   :  { %3129 = vmatprep.subr.mxu1 %v3861_v56 }
 0x4d8   :  { %3130 = vmatpush3.msra.mxu1 %v4096_v29 }
 0x4d9   :  { %3131 = vmatprep.subr.mxu1 %v3861_v56 }
 0x4da   :  { %3132 = vmatpush3.msra.mxu1 %v4102_v30 }
 0x4db   :  { %3133 = vmatprep.subr.mxu1 %v3861_v56 }
 0x4dc   :  { %3134 = vmatpush3.msra.mxu1 %v4108_v31 }
 0x4dd   :  { %3135 = vmatprep.subr.mxu1 %v3861_v56 }
 0x4de   :  { %3136 = vmatpush3.msra.mxu1 %v4114_v32 }
 0x4df   :  { %3137 = vmatprep.subr.mxu1 %v3861_v56 }
 0x4e0   :  { %3138 = vmatpush3.msra.mxu1 %v4120_v33 }
 0x581   :  { %v1004_v36 = vpop.f32.mrf.mxu1 }
 0x582   :  { %v1008_v37 = vadd.f32 %v1004_v36, %v4177_v60  ;;  %v1283_v60 = vld [vmem:[#allocation15 + $0x20] sm:$0xff]  ;;  %v4442_v36 = vld [vmem:[#allocation17 + $0x8] sm:$0xff] }
 0x583   :  { %v3071_v38 = vpop.f32.mrf.mxu1 }
 0x584   :  { %3636 = vtanh.f32 %v1008_v37  ;;  %v4446_v37 = vld [vmem:[#allocation17] sm:$0xff] }
 0x591   :  { %v4334_v39 = vpop.eup %3636 }
 0x592   :  { %3105 = vmatmul.mubr.f32.vlgmr.msra.gmra.mxu0 %v4334_v39 }
 0x593   :  { %3143 = vmatpush3.msra.mxu0 %v4029_v5  ;;  %3174 = vmatprep.mubr.msk.f32.mxu0 %vm3862_vm0, %v3861_v56 }
 0x594   :  { %3144 = vmatprep.subr.mxu0 %v3861_v56 }
 0x595   :  { %3145 = vmatpush3.msra.mxu0 %v4032_v10 }
 0x596   :  { %3146 = vmatprep.subr.mxu0 %v3861_v56 }
 0x597   :  { %3147 = vmatpush3.msra.mxu0 %v4036_v13 }
 0x598   :  { %3148 = vmatprep.subr.mxu0 %v3861_v56 }
 0x599   :  { %3149 = vmatpush3.msra.mxu0 %v4040_v18 }
 0x59a   :  { %3150 = vmatprep.subr.mxu0 %v3861_v56 }
 0x59b   :  { %3151 = vmatpush3.msra.mxu0 %v4044_v21  ;;  %v1270_v21 = vld [vmem:[#allocation14 + $0x78] sm:$0xff] }
 0x59c   :  { %3152 = vmatprep.subr.mxu0 %v3861_v56 }
 0x59d   :  { %3153 = vmatpush3.msra.mxu0 %v4051_v23  ;;  %v1294_v23 = vld [vmem:[#allocation15 + $0x78] sm:$0xff] }
 0x59e   :  { %3154 = vmatprep.subr.mxu0 %v3861_v56  ;;  %3177 = vmatprep.subr.mxu1 %v1294_v23 }
 0x59f   :  { %3155 = vmatpush3.msra.mxu0 %v4058_v24  ;;  %v1293_v24 = vld [vmem:[#allocation15 + $0x70] sm:$0xff] }
 0x5a0   :  { %3156 = vmatprep.subr.mxu0 %v3861_v56 }
 0x5a1   :  { %3157 = vmatpush3.msra.mxu0 %v4066_v25  ;;  %v1292_v25 = vld [vmem:[#allocation15 + $0x68] sm:$0xff] }
 0x5a2   :  { %3158 = vmatprep.subr.mxu0 %v3861_v56 }
 0x5a3   :  { %3159 = vmatpush3.msra.mxu0 %v4078_v26  ;;  %v1291_v26 = vld [vmem:[#allocation15 + $0x60] sm:$0xff] }
 0x5a4   :  { %3160 = vmatprep.subr.mxu0 %v3861_v56 }
 0x5a5   :  { %3161 = vmatpush3.msra.mxu0 %v4084_v27  ;;  %v1290_v27 = vld [vmem:[#allocation15 + $0x58] sm:$0xff] }
 0x5a6   :  { %3162 = vmatprep.subr.mxu0 %v3861_v56 }
 0x5a7   :  { %3163 = vmatpush3.msra.mxu0 %v4090_v28  ;;  %v1289_v28 = vld [vmem:[#allocation15 + $0x50] sm:$0xff] }
 0x5a8   :  { %3164 = vmatprep.subr.mxu0 %v3861_v56 }
 0x5a9   :  { %3165 = vmatpush3.msra.mxu0 %v4096_v29  ;;  %v1288_v29 = vld [vmem:[#allocation15 + $0x48] sm:$0xff] }
 0x5aa   :  { %3166 = vmatprep.subr.mxu0 %v3861_v56 }
 0x5ab   :  { %3167 = vmatpush3.msra.mxu0 %v4102_v30  ;;  %v1287_v30 = vld [vmem:[#allocation15 + $0x40] sm:$0xff] }
 0x5ac   :  { %3168 = vmatprep.subr.mxu0 %v3861_v56 }
 0x5ad   :  { %3169 = vmatpush3.msra.mxu0 %v4108_v31 }
 0x5ae   :  { %3170 = vmatprep.subr.mxu0 %v3861_v56 }
 0x5af   :  { %3171 = vmatpush3.msra.mxu0 %v4114_v32 }
 0x5b0   :  { %3172 = vmatprep.subr.mxu0 %v3861_v56 }
 0x5b1   :  { %3173 = vmatpush3.msra.mxu0 %v4120_v33 }
 0x5b2   :  { %3221 = vmatprep.subr.mxu0 %v1270_v21 }
 0x652   :  { %v1082_v5 = vpop.f32.mrf.mxu0 }
 0x653   :  { %v1086_v10 = vadd.f32 %v1082_v5, %v4175_v57  ;;  %v1286_v57 = vld [vmem:[#allocation15 + $0x38] sm:$0xff] }
 0x654   :  { %v3106_v13 = vpop.f32.mrf.mxu0 }
 0x655   :  { %3638 = vtanh.f32 %v1086_v10 }
 0x662   :  { %v4371_v18 = vpop.eup %3638 }
 0x663   :  { %3140 = vmatmul.mubr.f32.vlgmr.msra.gmra.mxu1 %v4371_v18 }
 0x664   :  { %3178 = vmatpush3.msra.mxu1 %v1294_v23 }
 0x665   :  { %3179 = vmatprep.subr.mxu1 %v1293_v24 }
 0x666   :  { %3180 = vmatpush3.msra.mxu1 %v1293_v24 }
 0x667   :  { %3181 = vmatprep.subr.mxu1 %v1292_v25 }
 0x668   :  { %3182 = vmatpush3.msra.mxu1 %v1292_v25 }
 0x669   :  { %3183 = vmatprep.subr.mxu1 %v1291_v26 }
 0x66a   :  { %3184 = vmatpush3.msra.mxu1 %v1291_v26 }
 0x66b   :  { %3185 = vmatprep.subr.mxu1 %v1290_v27 }
 0x66c   :  { %3186 = vmatpush3.msra.mxu1 %v1290_v27 }
 0x66d   :  { %3187 = vmatprep.subr.mxu1 %v1289_v28 }
 0x66e   :  { %3188 = vmatpush3.msra.mxu1 %v1289_v28 }
 0x66f   :  { %3189 = vmatprep.subr.mxu1 %v1288_v29 }
 0x670   :  { %3190 = vmatpush3.msra.mxu1 %v1288_v29 }
 0x671   :  { %3191 = vmatprep.subr.mxu1 %v1287_v30 }
 0x672   :  { %3192 = vmatpush3.msra.mxu1 %v1287_v30 }
 0x673   :  { %3193 = vmatprep.subr.mxu1 %v1286_v57 }
 0x674   :  { %3194 = vmatpush3.msra.mxu1 %v1286_v57 }
 0x675   :  { %3195 = vmatprep.subr.mxu1 %v1285_v58 }
 0x676   :  { %3196 = vmatpush3.msra.mxu1 %v1285_v58 }
 0x677   :  { %3197 = vmatprep.subr.mxu1 %v1284_v59 }
 0x678   :  { %3198 = vmatpush3.msra.mxu1 %v1284_v59 }
 0x679   :  { %3199 = vmatprep.subr.mxu1 %v1283_v60 }
 0x67a   :  { %3200 = vmatpush3.msra.mxu1 %v1283_v60 }
 0x67b   :  { %3201 = vmatprep.subr.mxu1 %v1282_v61 }
 0x67c   :  { %3202 = vmatpush3.msra.mxu1 %v1282_v61 }
 0x67d   :  { %3203 = vmatprep.subr.mxu1 %v1281_v62 }
 0x67e   :  { %3204 = vmatpush3.msra.mxu1 %v1281_v62 }
 0x67f   :  { %3205 = vmatprep.subr.mxu1 %v1280_v63 }
 0x680   :  { %3206 = vmatpush3.msra.mxu1 %v1280_v63 }
 0x723   :  { %v1160_v31 = vpop.f32.mrf.mxu1 }
 0x724   :  { %v1164_v32 = vadd.f32 %v1160_v31, %v4181_v1  ;;  %v1279_v1 = vld [vmem:[#allocation15] sm:$0xff] }
 0x725   :  { %v3141_v33 = vpop.f32.mrf.mxu1  ;;  %3207 = vmatprep.subr.mxu1 %v1279_v1 }
 0x726   :  { %3640 = vtanh.f32 %v1164_v32  ;;  %3208 = vmatpush3.msra.mxu1 %v1279_v1 }
 0x727   :  { %3265 = vmatprep.subr.mxu1 %v3861_v56 }
 0x733   :  { %v4375_v40 = vpop.eup %3640 }
 0x734   :  { %3175 = vmatmul.mubr.f32.vlgmr.msra.gmra.mxu0 %v4375_v40 }
 0x735   :  { %3222 = vmatpush3.msra.mxu0 %v1270_v21  ;;  %3253 = vmatprep.mubr.f32.mxu0 %v4183_v8 }
 0x736   :  { %3223 = vmatprep.subr.mxu0 %v1269_v41 }
 0x737   :  { %3224 = vmatpush3.msra.mxu0 %v1269_v41 }
 0x738   :  { %3225 = vmatprep.subr.mxu0 %v1268_v42 }
 0x739   :  { %3226 = vmatpush3.msra.mxu0 %v1268_v42 }
 0x73a   :  { %3227 = vmatprep.subr.mxu0 %v1267_v43 }
 0x73b   :  { %3228 = vmatpush3.msra.mxu0 %v1267_v43 }
 0x73c   :  { %3229 = vmatprep.subr.mxu0 %v1266_v44 }
 0x73d   :  { %3230 = vmatpush3.msra.mxu0 %v1266_v44 }
 0x73e   :  { %3231 = vmatprep.subr.mxu0 %v1265_v45 }
 0x73f   :  { %3232 = vmatpush3.msra.mxu0 %v1265_v45 }
 0x740   :  { %3233 = vmatprep.subr.mxu0 %v1264_v46 }
 0x741   :  { %3234 = vmatpush3.msra.mxu0 %v1264_v46 }
 0x742   :  { %3235 = vmatprep.subr.mxu0 %v1263_v47 }
 0x743   :  { %3236 = vmatpush3.msra.mxu0 %v1263_v47 }
 0x744   :  { %3237 = vmatprep.subr.mxu0 %v1262_v48 }
 0x745   :  { %3238 = vmatpush3.msra.mxu0 %v1262_v48 }
 0x746   :  { %3239 = vmatprep.subr.mxu0 %v1261_v49 }
 0x747   :  { %3240 = vmatpush3.msra.mxu0 %v1261_v49 }
 0x748   :  { %3241 = vmatprep.subr.mxu0 %v1260_v50 }
 0x749   :  { %3242 = vmatpush3.msra.mxu0 %v1260_v50 }
 0x74a   :  { %3243 = vmatprep.subr.mxu0 %v1259_v51 }
 0x74b   :  { %3244 = vmatpush3.msra.mxu0 %v1259_v51 }
 0x74c   :  { %3245 = vmatprep.subr.mxu0 %v1258_v52 }
 0x74d   :  { %3246 = vmatpush3.msra.mxu0 %v1258_v52 }
 0x74e   :  { %3247 = vmatprep.subr.mxu0 %v1257_v53 }
 0x74f   :  { %3248 = vmatpush3.msra.mxu0 %v1257_v53 }
 0x750   :  { %3249 = vmatprep.subr.mxu0 %v1256_v54 }
 0x751   :  { %3250 = vmatpush3.msra.mxu0 %v1256_v54 }
 0x752   :  { %3251 = vmatprep.subr.mxu0 %v1255_v55 }
 0x753   :  { %3252 = vmatpush3.msra.mxu0 %v1255_v55 }
 0x754   :  { %3254 = vmatmul.mubr.f32.vlgmr.msra.gmra.mxu0 %v4221_v14  ;;  %3300 = vmatprep.subr.mxu0 %v3861_v56 }
 0x755   :  { %3256 = vmatprep.mubr.f32.mxu0 %v4259_v19  ;;  %3301 = vmatpush3.msra.mxu0 %v4387_v2 }
 0x756   :  { %3302 = vmatprep.subr.mxu0 %v3861_v56 }
 0x757   :  { %3303 = vmatpush3.msra.mxu0 %v4390_v3 }
 0x758   :  { %3257 = vmatmul.mubr.f32.gmra.mxu0 %v4297_v35  ;;  %3304 = vmatprep.subr.mxu0 %v3861_v56 }
 0x759   :  { %3259 = vmatprep.mubr.f32.mxu0 %v4334_v39  ;;  %3305 = vmatpush3.msra.mxu0 %v4394_v4 }
 0x75a   :  { %3306 = vmatprep.subr.mxu0 %v3861_v56 }
 0x75b   :  { %3307 = vmatpush3.msra.mxu0 %v4398_v6 }
 0x75c   :  { %3260 = vmatmul.mubr.f32.gmra.mxu0 %v4371_v18  ;;  %3308 = vmatprep.subr.mxu0 %v3861_v56 }
 0x75d   :  { %3262 = vmatprep.mubr.f32.mxu0 %v4375_v40  ;;  %3309 = vmatpush3.msra.mxu0 %v4402_v7 }
 0x75e   :  { %3310 = vmatprep.subr.mxu0 %v3861_v56 }
 0x75f   :  { %3311 = vmatpush3.msra.mxu0 %v4406_v9 }
 0x760   :  { %3312 = vmatprep.subr.mxu0 %v3861_v56 }
 0x761   :  { %3313 = vmatpush3.msra.mxu0 %v4410_v11 }
 0x762   :  { %3314 = vmatprep.subr.mxu0 %v3861_v56 }
 0x763   :  { %3315 = vmatpush3.msra.mxu0 %v4414_v12 }
 0x764   :  { %3316 = vmatprep.subr.mxu0 %v3861_v56 }
 0x765   :  { %3317 = vmatpush3.msra.mxu0 %v4418_v15 }
 0x766   :  { %3318 = vmatprep.subr.mxu0 %v3861_v56 }
 0x767   :  { %3319 = vmatpush3.msra.mxu0 %v4422_v16 }
 0x768   :  { %3320 = vmatprep.subr.mxu0 %v3861_v56 }
 0x769   :  { %3321 = vmatpush3.msra.mxu0 %v4426_v17 }
 0x76a   :  { %3322 = vmatprep.subr.mxu0 %v3861_v56 }
 0x76b   :  { %3323 = vmatpush3.msra.mxu0 %v4430_v20 }
 0x76c   :  { %3324 = vmatprep.subr.mxu0 %v3861_v56 }
 0x76d   :  { %3325 = vmatpush3.msra.mxu0 %v4434_v22 }
 0x76e   :  { %3326 = vmatprep.subr.mxu0 %v3861_v56 }
 0x76f   :  { %3327 = vmatpush3.msra.mxu0 %v4438_v34 }
 0x770   :  { %3328 = vmatprep.subr.mxu0 %v3861_v56 }
 0x771   :  { %3329 = vmatpush3.msra.mxu0 %v4442_v36 }
 0x772   :  { %3330 = vmatprep.subr.mxu0 %v3861_v56 }
 0x773   :  { %3331 = vmatpush3.msra.mxu0 %v4446_v37 }
 0x774   :  { %3370 = vmatprep.subr.mxu0 %v3861_v56 }
 0x7f4   :  { %v1238_v38 = vpop.f32.mrf.mxu0 }
 0x7f5   :  { %v1242_v5 = vadd.f32 %v1238_v38, %v4179_v0 }
 0x7f6   :  { %v3176_v10 = vpop.f32.mrf.mxu0 }
 0x7f7   :  { %3642 = vtanh.f32 %v1242_v5 }
 0x804   :  { %v3643_v13 = vpop.eup %3642 }
 0x805   :  { %3209 = vmatprep.mubr.f32.mxu1 %v3643_v13  ;;  %3263 = vmatmul.mubr.f32.gmra.mxu0 %v3643_v13 }
 0x806   :  { %3210 = vmatmul.mubr.f32.vlgmr.msra.gmra.mxu1 %v4375_v40  ;;  %3332 = vmatprep.mubr.msk.f32.mxu0 %vm3862_vm0, %v3861_v56 }
 0x807   :  { %3266 = vmatpush3.msra.mxu1 %v4387_v2  ;;  %3212 = vmatprep.mubr.f32.mxu1 %v4371_v18 }
 0x808   :  { %3267 = vmatprep.subr.mxu1 %v3861_v56 }
 0x809   :  { %3268 = vmatpush3.msra.mxu1 %v4390_v3 }
 0x80a   :  { %3269 = vmatprep.subr.mxu1 %v3861_v56  ;;  %3213 = vmatmul.mubr.f32.gmra.mxu1 %v4334_v39  ;;  %v2337_v39 = vld [vmem:[%s4777_s9] ss:$0 sm:$0xff] }
 0x80b   :  { %3270 = vmatpush3.msra.mxu1 %v4394_v4  ;;  %3215 = vmatprep.mubr.f32.mxu1 %v4297_v35 }
 0x80c   :  { %3271 = vmatprep.subr.mxu1 %v3861_v56 }
 0x80d   :  { %3272 = vmatpush3.msra.mxu1 %v4398_v6 }
 0x80e   :  { %3273 = vmatprep.subr.mxu1 %v3861_v56  ;;  %3216 = vmatmul.mubr.f32.gmra.mxu1 %v4259_v19 }
 0x80f   :  { %3274 = vmatpush3.msra.mxu1 %v4402_v7  ;;  %3218 = vmatprep.mubr.f32.mxu1 %v4221_v14 }
 0x810   :  { %3275 = vmatprep.subr.mxu1 %v3861_v56 }
 0x811   :  { %3276 = vmatpush3.msra.mxu1 %v4406_v9 }
 0x812   :  { %3277 = vmatprep.subr.mxu1 %v3861_v56  ;;  %3219 = vmatmul.mubr.f32.gmra.mxu1 %v4183_v8 }
 0x813   :  { %3278 = vmatpush3.msra.mxu1 %v4410_v11  ;;  %3297 = vmatprep.mubr.msk.f32.mxu1 %vm3862_vm0, %v3861_v56 }
 0x814   :  { %3279 = vmatprep.subr.mxu1 %v3861_v56  ;;  %v3255_v0 = vpop.f32.mrf.mxu0 }
 0x815   :  { %3280 = vmatpush3.msra.mxu1 %v4414_v12 }
 0x816   :  { %3281 = vmatprep.subr.mxu1 %v3861_v56  ;;  %v1466_v8 = vpop.f32.mrf.mxu0 }
 0x817   :  { %3282 = vmatpush3.msra.mxu1 %v4418_v15 }
 0x818   :  { %3283 = vmatprep.subr.mxu1 %v3861_v56  ;;  %v3258_v14 = vpop.f32.mrf.mxu0 }
 0x819   :  { %3284 = vmatpush3.msra.mxu1 %v4422_v16 }
 0x81a   :  { %3285 = vmatprep.subr.mxu1 %v3861_v56  ;;  %v1476_v19 = vpop.f32.mrf.mxu0 }
 0x81b   :  { %3286 = vmatpush3.msra.mxu1 %v4426_v17 }
 0x81c   :  { %3287 = vmatprep.subr.mxu1 %v3861_v56  ;;  %v3261_v24 = vpop.f32.mrf.mxu0 }
 0x81d   :  { %3288 = vmatpush3.msra.mxu1 %v4430_v20 }
 0x81e   :  { %3289 = vmatprep.subr.mxu1 %v3861_v56  ;;  %v1486_v30 = vpop.f32.mrf.mxu0 }
 0x81f   :  { %3290 = vmatpush3.msra.mxu1 %v4434_v22 }
 0x820   :  { %3291 = vmatprep.subr.mxu1 %v3861_v56 }
 0x821   :  { %3292 = vmatpush3.msra.mxu1 %v4438_v34 }
 0x822   :  { %3293 = vmatprep.subr.mxu1 %v3861_v56 }
 0x823   :  { %3294 = vmatpush3.msra.mxu1 %v4442_v36 }
 0x824   :  { %3295 = vmatprep.subr.mxu1 %v3861_v56 }
 0x825   :  { %3296 = vmatpush3.msra.mxu1 %v4446_v37 }
 0x826   :  { %3298 = vmatmul.mubr.f32.vlgmr.msra.gmra.mxu1 %v3861_v56  ;;  %3335 = vmatprep.subr.mxu1 %v3861_v56 }
 0x827   :  { %3336 = vmatpush3.msra.mxu1 %v4387_v2  ;;  %3367 = vmatprep.mubr.msk.f32.mxu1 %vm3862_vm0, %v3861_v56 }
 0x828   :  { %3337 = vmatprep.subr.mxu1 %v3861_v56 }
 0x829   :  { %3338 = vmatpush3.msra.mxu1 %v4390_v3 }
 0x82a   :  { %3339 = vmatprep.subr.mxu1 %v3861_v56 }
 0x82b   :  { %3340 = vmatpush3.msra.mxu1 %v4394_v4 }
 0x82c   :  { %3341 = vmatprep.subr.mxu1 %v3861_v56 }
 0x82d   :  { %3342 = vmatpush3.msra.mxu1 %v4398_v6 }
 0x82e   :  { %3343 = vmatprep.subr.mxu1 %v3861_v56 }
 0x82f   :  { %3344 = vmatpush3.msra.mxu1 %v4402_v7 }
 0x830   :  { %3345 = vmatprep.subr.mxu1 %v3861_v56 }
 0x831   :  { %3346 = vmatpush3.msra.mxu1 %v4406_v9 }
 0x832   :  { %3347 = vmatprep.subr.mxu1 %v3861_v56 }
 0x833   :  { %3348 = vmatpush3.msra.mxu1 %v4410_v11 }
 0x834   :  { %3349 = vmatprep.subr.mxu1 %v3861_v56 }
 0x835   :  { %3350 = vmatpush3.msra.mxu1 %v4414_v12 }
 0x836   :  { %3351 = vmatprep.subr.mxu1 %v3861_v56 }
 0x837   :  { %3352 = vmatpush3.msra.mxu1 %v4418_v15 }
 0x838   :  { %3353 = vmatprep.subr.mxu1 %v3861_v56 }
 0x839   :  { %3354 = vmatpush3.msra.mxu1 %v4422_v16 }
 0x83a   :  { %3355 = vmatprep.subr.mxu1 %v3861_v56 }
 0x83b   :  { %3356 = vmatpush3.msra.mxu1 %v4426_v17 }
 0x83c   :  { %3357 = vmatprep.subr.mxu1 %v3861_v56 }
 0x83d   :  { %3358 = vmatpush3.msra.mxu1 %v4430_v20 }
 0x83e   :  { %3359 = vmatprep.subr.mxu1 %v3861_v56 }
 0x83f   :  { %3360 = vmatpush3.msra.mxu1 %v4434_v22 }
 0x840   :  { %3361 = vmatprep.subr.mxu1 %v3861_v56 }
 0x841   :  { %3362 = vmatpush3.msra.mxu1 %v4438_v34 }
 0x842   :  { %3363 = vmatprep.subr.mxu1 %v3861_v56 }
 0x843   :  { %3364 = vmatpush3.msra.mxu1 %v4442_v36 }
 0x844   :  { %3365 = vmatprep.subr.mxu1 %v3861_v56 }
 0x845   :  { %3366 = vmatpush3.msra.mxu1 %v4446_v37 }
 0x846   :  { %3405 = vmatprep.subr.mxu1 %v3861_v56 }
 0x8c5   :  { %v3264_v40 = vpop.f32.mrf.mxu0 }
 0x8c6   :  { %v3211_v35 = vpop.f32.mrf.mxu1 }
 0x8c7   :  { %v1472_v18 = vadd.f32 %v3255_v0, %v3211_v35  ;;  %v1496_v47 = vpop.f32.mrf.mxu0 }
 0x8c8   :  { %v1361_v21 = vpop.f32.mrf.mxu1 }
 0x8c9   :  { %v4533_v23 = vadd.f32 %v2337_v39, %v1472_v18  ;;  %v1467_v52 = vadd.f32 %v1466_v8, %v1361_v21  ;;  %v2164_v18 = vld [vmem:[#allocation20 + $0x18] sm:$0xff]  ;;  %v2163_v21 = vld [vmem:[#allocation20 + $0x10] sm:$0xff] }
 0x8ca   :  { %v3214_v25 = vpop.f32.mrf.mxu1 }
 0x8cb   :  { %v1482_v26 = vadd.f32 %v3258_v14, %v3214_v25  ;;  %v1512_v53 = vadd.f32 %v2337_v39, %v1467_v52  ;;  %v2146_v52 = vld [vmem:[#allocation18 + $0x8] sm:$0xff] }
 0x8cc   :  { %v1371_v27 = vpop.f32.mrf.mxu1 }
 0x8cd   :  { %v1477_v28 = vadd.f32 %v1476_v19, %v1371_v27  ;;  %v4535_v29 = vadd.f32 %v2337_v39, %v1482_v26 }
 0x8ce   :  { %v3217_v31 = vpop.f32.mrf.mxu1 }
 0x8cf   :  { %v1492_v32 = vadd.f32 %v3261_v24, %v3217_v31  ;;  %v4537_v33 = vadd.f32 %v2337_v39, %v1477_v28  ;;  %v2161_v24 = vld [vmem:[#allocation20] sm:$0xff]  ;;  %v2160_v28 = vld [vmem:[#allocation18 + $0x78] sm:$0xff]  ;;  %v2158_v31 = vld [vmem:[#allocation18 + $0x68] sm:$0xff] }
 0x8d0   :  { %v1381_v41 = vpop.f32.mrf.mxu1 }
 0x8d1   :  { %v1487_v42 = vadd.f32 %v1486_v30, %v1381_v41  ;;  %v4539_v43 = vadd.f32 %v2337_v39, %v1492_v32  ;;  %v2159_v30 = vld [vmem:[#allocation18 + $0x70] sm:$0xff]  ;;  %v2157_v32 = vld [vmem:[#allocation18 + $0x60] sm:$0xff]  ;;  %v2154_v41 = vld [vmem:[#allocation18 + $0x48] sm:$0xff] }
 0x8d2   :  { %v3220_v44 = vpop.f32.mrf.mxu1 }
 0x8d3   :  { %v1502_v45 = vadd.f32 %v3264_v40, %v3220_v44  ;;  %v4541_v46 = vadd.f32 %v2337_v39, %v1487_v42  ;;  %v2155_v40 = vld [vmem:[#allocation18 + $0x50] sm:$0xff]  ;;  %v2153_v44 = vld [vmem:[#allocation18 + $0x40] sm:$0xff] }
 0x8d4   :  { %v1391_v48 = vpop.f32.mrf.mxu1 }
 0x8d5   :  { %v1497_v49 = vadd.f32 %v1496_v47, %v1391_v48  ;;  %v4543_v50 = vadd.f32 %v2337_v39, %v1502_v45  ;;  %v2152_v45 = vld [vmem:[#allocation18 + $0x38] sm:$0xff]  ;;  %v2150_v47 = vld [vmem:[#allocation18 + $0x28] sm:$0xff]  ;;  %v2149_v48 = vld [vmem:[#allocation18 + $0x20] sm:$0xff] }
 0x8d7   :  { %v4545_v51 = vadd.f32 %v2337_v39, %v1497_v49  ;;  %v2148_v49 = vld [vmem:[#allocation18 + $0x18] sm:$0xff] }
 0x8e6   :  { %v1611_v54 = vpop.f32.mrf.mxu1 }
 0x8e7   :  { %v1615_v55 = vadd.f32 %v1611_v54, %v1512_v53  ;;  %v2145_v53 = vld [vmem:[#allocation18] sm:$0xff] }
 0x8e8   :  { %v3299_v57 = vpop.f32.mrf.mxu1 }
 0x8e9   :  { %3644 = vtanh.f32 %v1615_v55 }
 0x8f6   :  { %v4547_v58 = vpop.eup %3644 }
 0x8f7   :  { %3333 = vmatmul.mubr.f32.vlgmr.msra.gmra.mxu0 %v4547_v58 }
 0x8f8   :  { %3371 = vmatpush3.msra.mxu0 %v4387_v2  ;;  %3402 = vmatprep.mubr.msk.f32.mxu0 %vm3862_vm0, %v3861_v56 }
 0x8f9   :  { %3372 = vmatprep.subr.mxu0 %v3861_v56 }
 0x8fa   :  { %3373 = vmatpush3.msra.mxu0 %v4390_v3 }
 0x8fb   :  { %3374 = vmatprep.subr.mxu0 %v3861_v56 }
 0x8fc   :  { %3375 = vmatpush3.msra.mxu0 %v4394_v4 }
 0x8fd   :  { %3376 = vmatprep.subr.mxu0 %v3861_v56 }
 0x8fe   :  { %3377 = vmatpush3.msra.mxu0 %v4398_v6 }
 0x8ff   :  { %3378 = vmatprep.subr.mxu0 %v3861_v56 }
 0x900   :  { %3379 = vmatpush3.msra.mxu0 %v4402_v7 }
 0x901   :  { %3380 = vmatprep.subr.mxu0 %v3861_v56 }
 0x902   :  { %3381 = vmatpush3.msra.mxu0 %v4406_v9 }
 0x903   :  { %3382 = vmatprep.subr.mxu0 %v3861_v56 }
 0x904   :  { %3383 = vmatpush3.msra.mxu0 %v4410_v11 }
 0x905   :  { %3384 = vmatprep.subr.mxu0 %v3861_v56 }
 0x906   :  { %3385 = vmatpush3.msra.mxu0 %v4414_v12 }
 0x907   :  { %3386 = vmatprep.subr.mxu0 %v3861_v56 }
 0x908   :  { %3387 = vmatpush3.msra.mxu0 %v4418_v15 }
 0x909   :  { %3388 = vmatprep.subr.mxu0 %v3861_v56 }
 0x90a   :  { %3389 = vmatpush3.msra.mxu0 %v4422_v16 }
 0x90b   :  { %3390 = vmatprep.subr.mxu0 %v3861_v56 }
 0x90c   :  { %3391 = vmatpush3.msra.mxu0 %v4426_v17 }
 0x90d   :  { %3392 = vmatprep.subr.mxu0 %v3861_v56 }
 0x90e   :  { %3393 = vmatpush3.msra.mxu0 %v4430_v20 }
 0x90f   :  { %3394 = vmatprep.subr.mxu0 %v3861_v56 }
 0x910   :  { %3395 = vmatpush3.msra.mxu0 %v4434_v22 }
 0x911   :  { %3396 = vmatprep.subr.mxu0 %v3861_v56 }
 0x912   :  { %3397 = vmatpush3.msra.mxu0 %v4438_v34 }
 0x913   :  { %3398 = vmatprep.subr.mxu0 %v3861_v56 }
 0x914   :  { %3399 = vmatpush3.msra.mxu0 %v4442_v36 }
 0x915   :  { %3400 = vmatprep.subr.mxu0 %v3861_v56 }
 0x916   :  { %3401 = vmatpush3.msra.mxu0 %v4446_v37 }
 0x917   :  { %3440 = vmatprep.subr.mxu0 %v3861_v56 }
 0x9b7   :  { %v1685_v59 = vpop.f32.mrf.mxu0 }
 0x9b8   :  { %v1689_v60 = vadd.f32 %v1685_v59, %v4533_v23  ;;  %v2162_v23 = vld [vmem:[#allocation20 + $0x8] sm:$0xff] }
 0x9b9   :  { %v3334_v61 = vpop.f32.mrf.mxu0 }
 0x9ba   :  { %3646 = vtanh.f32 %v1689_v60  ;;  %v2338_v60 = vld [vmem:[%s4781_s13] ss:$0 sm:$0xff] }
 0x9c7   :  { %v3647_v62 = vpop.eup %3646 }
 0x9c8   :  { %3368 = vmatmul.mubr.f32.vlgmr.msra.gmra.mxu1 %v3647_v62 }
 0x9c9   :  { %3406 = vmatpush3.msra.mxu1 %v4387_v2  ;;  %3437 = vmatprep.mubr.msk.f32.mxu1 %vm3862_vm0, %v3861_v56 }
 0x9ca   :  { %3407 = vmatprep.subr.mxu1 %v3861_v56 }
 0x9cb   :  { %3408 = vmatpush3.msra.mxu1 %v4390_v3 }
 0x9cc   :  { %3409 = vmatprep.subr.mxu1 %v3861_v56 }
 0x9cd   :  { %3410 = vmatpush3.msra.mxu1 %v4394_v4 }
 0x9ce   :  { %3411 = vmatprep.subr.mxu1 %v3861_v56 }
 0x9cf   :  { %3412 = vmatpush3.msra.mxu1 %v4398_v6 }
 0x9d0   :  { %3413 = vmatprep.subr.mxu1 %v3861_v56 }
 0x9d1   :  { %3414 = vmatpush3.msra.mxu1 %v4402_v7 }
 0x9d2   :  { %3415 = vmatprep.subr.mxu1 %v3861_v56 }
 0x9d3   :  { %3416 = vmatpush3.msra.mxu1 %v4406_v9 }
 0x9d4   :  { %3417 = vmatprep.subr.mxu1 %v3861_v56 }
 0x9d5   :  { %3418 = vmatpush3.msra.mxu1 %v4410_v11 }
 0x9d6   :  { %3419 = vmatprep.subr.mxu1 %v3861_v56 }
 0x9d7   :  { %3420 = vmatpush3.msra.mxu1 %v4414_v12 }
 0x9d8   :  { %3421 = vmatprep.subr.mxu1 %v3861_v56 }
 0x9d9   :  { %3422 = vmatpush3.msra.mxu1 %v4418_v15 }
 0x9da   :  { %3423 = vmatprep.subr.mxu1 %v3861_v56 }
 0x9db   :  { %3424 = vmatpush3.msra.mxu1 %v4422_v16 }
 0x9dc   :  { %3425 = vmatprep.subr.mxu1 %v3861_v56 }
 0x9dd   :  { %3426 = vmatpush3.msra.mxu1 %v4426_v17 }
 0x9de   :  { %3427 = vmatprep.subr.mxu1 %v3861_v56 }
 0x9df   :  { %3428 = vmatpush3.msra.mxu1 %v4430_v20 }
 0x9e0   :  { %3429 = vmatprep.subr.mxu1 %v3861_v56 }
 0x9e1   :  { %3430 = vmatpush3.msra.mxu1 %v4434_v22 }
 0x9e2   :  { %3431 = vmatprep.subr.mxu1 %v3861_v56 }
 0x9e3   :  { %3432 = vmatpush3.msra.mxu1 %v4438_v34 }
 0x9e4   :  { %3433 = vmatprep.subr.mxu1 %v3861_v56 }
 0x9e5   :  { %3434 = vmatpush3.msra.mxu1 %v4442_v36 }
 0x9e6   :  { %3435 = vmatprep.subr.mxu1 %v3861_v56 }
 0x9e7   :  { %3436 = vmatpush3.msra.mxu1 %v4446_v37 }
 0x9e8   :  { %3475 = vmatprep.subr.mxu1 %v3861_v56 }
 0xa88   :  { %v1760_v63 = vpop.f32.mrf.mxu1 }
 0xa89   :  { %v1764_v1 = vadd.f32 %v1760_v63, %v4537_v33  ;;  %v2156_v33 = vld [vmem:[#allocation18 + $0x58] sm:$0xff] }
 0xa8a   :  { %v3369_v38 = vpop.f32.mrf.mxu1 }
 0xa8b   :  { %3648 = vtanh.f32 %v1764_v1 }
 0xa98   :  { %v3649_v5 = vpop.eup %3648 }
 0xa99   :  { %3403 = vmatmul.mubr.f32.vlgmr.msra.gmra.mxu0 %v3649_v5 }
 0xa9a   :  { %3441 = vmatpush3.msra.mxu0 %v4387_v2  ;;  %3472 = vmatprep.mubr.msk.f32.mxu0 %vm3862_vm0, %v3861_v56 }
 0xa9b   :  { %3442 = vmatprep.subr.mxu0 %v3861_v56 }
 0xa9c   :  { %3443 = vmatpush3.msra.mxu0 %v4390_v3 }
 0xa9d   :  { %3444 = vmatprep.subr.mxu0 %v3861_v56 }
 0xa9e   :  { %3445 = vmatpush3.msra.mxu0 %v4394_v4 }
 0xa9f   :  { %3446 = vmatprep.subr.mxu0 %v3861_v56 }
 0xaa0   :  { %3447 = vmatpush3.msra.mxu0 %v4398_v6 }
 0xaa1   :  { %3448 = vmatprep.subr.mxu0 %v3861_v56 }
 0xaa2   :  { %3449 = vmatpush3.msra.mxu0 %v4402_v7 }
 0xaa3   :  { %3450 = vmatprep.subr.mxu0 %v3861_v56 }
 0xaa4   :  { %3451 = vmatpush3.msra.mxu0 %v4406_v9 }
 0xaa5   :  { %3452 = vmatprep.subr.mxu0 %v3861_v56 }
 0xaa6   :  { %3453 = vmatpush3.msra.mxu0 %v4410_v11 }
 0xaa7   :  { %3454 = vmatprep.subr.mxu0 %v3861_v56 }
 0xaa8   :  { %3455 = vmatpush3.msra.mxu0 %v4414_v12 }
 0xaa9   :  { %3456 = vmatprep.subr.mxu0 %v3861_v56 }
 0xaaa   :  { %3457 = vmatpush3.msra.mxu0 %v4418_v15 }
 0xaab   :  { %3458 = vmatprep.subr.mxu0 %v3861_v56 }
 0xaac   :  { %3459 = vmatpush3.msra.mxu0 %v4422_v16 }
 0xaad   :  { %3460 = vmatprep.subr.mxu0 %v3861_v56 }
 0xaae   :  { %3461 = vmatpush3.msra.mxu0 %v4426_v17 }
 0xaaf   :  { %3462 = vmatprep.subr.mxu0 %v3861_v56 }
 0xab0   :  { %3463 = vmatpush3.msra.mxu0 %v4430_v20 }
 0xab1   :  { %3464 = vmatprep.subr.mxu0 %v3861_v56 }
 0xab2   :  { %3465 = vmatpush3.msra.mxu0 %v4434_v22 }
 0xab3   :  { %3466 = vmatprep.subr.mxu0 %v3861_v56 }
 0xab4   :  { %3467 = vmatpush3.msra.mxu0 %v4438_v34 }
 0xab5   :  { %3468 = vmatprep.subr.mxu0 %v3861_v56 }
 0xab6   :  { %3469 = vmatpush3.msra.mxu0 %v4442_v36 }
 0xab7   :  { %3470 = vmatprep.subr.mxu0 %v3861_v56 }
 0xab8   :  { %3471 = vmatpush3.msra.mxu0 %v4446_v37 }
 0xab9   :  { %3510 = vmatprep.subr.mxu0 %v3861_v56 }
 0xb59   :  { %v1835_v10 = vpop.f32.mrf.mxu0 }
 0xb5a   :  { %v1839_v13 = vadd.f32 %v1835_v10, %v4535_v29 }
 0xb5b   :  { %v3404_v0 = vpop.f32.mrf.mxu0 }
 0xb5c   :  { %3650 = vtanh.f32 %v1839_v13 }
 0xb69   :  { %v3651_v8 = vpop.eup %3650 }
 0xb6a   :  { %3438 = vmatmul.mubr.f32.vlgmr.msra.gmra.mxu1 %v3651_v8 }
 0xb6b   :  { %3476 = vmatpush3.msra.mxu1 %v4387_v2  ;;  %3507 = vmatprep.mubr.msk.f32.mxu1 %vm3862_vm0, %v3861_v56 }
 0xb6c   :  { %3477 = vmatprep.subr.mxu1 %v3861_v56 }
 0xb6d   :  { %3478 = vmatpush3.msra.mxu1 %v4390_v3 }
 0xb6e   :  { %3479 = vmatprep.subr.mxu1 %v3861_v56 }
 0xb6f   :  { %3480 = vmatpush3.msra.mxu1 %v4394_v4 }
 0xb70   :  { %3481 = vmatprep.subr.mxu1 %v3861_v56 }
 0xb71   :  { %3482 = vmatpush3.msra.mxu1 %v4398_v6 }
 0xb72   :  { %3483 = vmatprep.subr.mxu1 %v3861_v56 }
 0xb73   :  { %3484 = vmatpush3.msra.mxu1 %v4402_v7 }
 0xb74   :  { %3485 = vmatprep.subr.mxu1 %v3861_v56 }
 0xb75   :  { %3486 = vmatpush3.msra.mxu1 %v4406_v9 }
 0xb76   :  { %3487 = vmatprep.subr.mxu1 %v3861_v56 }
 0xb77   :  { %3488 = vmatpush3.msra.mxu1 %v4410_v11 }
 0xb78   :  { %3489 = vmatprep.subr.mxu1 %v3861_v56 }
 0xb79   :  { %3490 = vmatpush3.msra.mxu1 %v4414_v12 }
 0xb7a   :  { %3491 = vmatprep.subr.mxu1 %v3861_v56 }
 0xb7b   :  { %3492 = vmatpush3.msra.mxu1 %v4418_v15 }
 0xb7c   :  { %3493 = vmatprep.subr.mxu1 %v3861_v56 }
 0xb7d   :  { %3494 = vmatpush3.msra.mxu1 %v4422_v16 }
 0xb7e   :  { %3495 = vmatprep.subr.mxu1 %v3861_v56 }
 0xb7f   :  { %3496 = vmatpush3.msra.mxu1 %v4426_v17 }
 0xb80   :  { %3497 = vmatprep.subr.mxu1 %v3861_v56 }
 0xb81   :  { %3498 = vmatpush3.msra.mxu1 %v4430_v20 }
 0xb82   :  { %3499 = vmatprep.subr.mxu1 %v3861_v56 }
 0xb83   :  { %3500 = vmatpush3.msra.mxu1 %v4434_v22 }
 0xb84   :  { %3501 = vmatprep.subr.mxu1 %v3861_v56 }
 0xb85   :  { %3502 = vmatpush3.msra.mxu1 %v4438_v34 }
 0xb86   :  { %3503 = vmatprep.subr.mxu1 %v3861_v56 }
 0xb87   :  { %3504 = vmatpush3.msra.mxu1 %v4442_v36 }
 0xb88   :  { %3505 = vmatprep.subr.mxu1 %v3861_v56 }
 0xb89   :  { %3506 = vmatpush3.msra.mxu1 %v4446_v37 }
 0xb8a   :  { %3545 = vmatprep.subr.mxu1 %v3861_v56 }
 0xc2a   :  { %v1910_v14 = vpop.f32.mrf.mxu1 }
 0xc2b   :  { %v1914_v19 = vadd.f32 %v1910_v14, %v4541_v46  ;;  %v2151_v46 = vld [vmem:[#allocation18 + $0x30] sm:$0xff] }
 0xc2c   :  { %v3439_v35 = vpop.f32.mrf.mxu1 }
 0xc2d   :  { %3652 = vtanh.f32 %v1914_v19 }
 0xc3a   :  { %v3653_v39 = vpop.eup %3652 }
 0xc3b   :  { %3473 = vmatmul.mubr.f32.vlgmr.msra.gmra.mxu0 %v3653_v39 }
 0xc3c   :  { %3511 = vmatpush3.msra.mxu0 %v4387_v2  ;;  %3542 = vmatprep.mubr.msk.f32.mxu0 %vm3862_vm0, %v3861_v56 }
 0xc3d   :  { %3512 = vmatprep.subr.mxu0 %v3861_v56 }
 0xc3e   :  { %3513 = vmatpush3.msra.mxu0 %v4390_v3 }
 0xc3f   :  { %3514 = vmatprep.subr.mxu0 %v3861_v56 }
 0xc40   :  { %3515 = vmatpush3.msra.mxu0 %v4394_v4 }
 0xc41   :  { %3516 = vmatprep.subr.mxu0 %v3861_v56 }
 0xc42   :  { %3517 = vmatpush3.msra.mxu0 %v4398_v6  ;;  %v2176_v6 = vld [vmem:[#allocation20 + $0x78] sm:$0xff] }
 0xc43   :  { %3518 = vmatprep.subr.mxu0 %v3861_v56 }
 0xc44   :  { %3519 = vmatpush3.msra.mxu0 %v4402_v7 }
 0xc45   :  { %3520 = vmatprep.subr.mxu0 %v3861_v56 }
 0xc46   :  { %3521 = vmatpush3.msra.mxu0 %v4406_v9  ;;  %v2175_v9 = vld [vmem:[#allocation20 + $0x70] sm:$0xff] }
 0xc47   :  { %3522 = vmatprep.subr.mxu0 %v3861_v56 }
 0xc48   :  { %3523 = vmatpush3.msra.mxu0 %v4410_v11  ;;  %v2174_v11 = vld [vmem:[#allocation20 + $0x68] sm:$0xff] }
 0xc49   :  { %3524 = vmatprep.subr.mxu0 %v3861_v56 }
 0xc4a   :  { %3525 = vmatpush3.msra.mxu0 %v4414_v12  ;;  %v2173_v12 = vld [vmem:[#allocation20 + $0x60] sm:$0xff] }
 0xc4b   :  { %3526 = vmatprep.subr.mxu0 %v3861_v56 }
 0xc4c   :  { %3527 = vmatpush3.msra.mxu0 %v4418_v15  ;;  %v2172_v15 = vld [vmem:[#allocation20 + $0x58] sm:$0xff] }
 0xc4d   :  { %3528 = vmatprep.subr.mxu0 %v3861_v56 }
 0xc4e   :  { %3529 = vmatpush3.msra.mxu0 %v4422_v16  ;;  %v2171_v16 = vld [vmem:[#allocation20 + $0x50] sm:$0xff] }
 0xc4f   :  { %3530 = vmatprep.subr.mxu0 %v3861_v56 }
 0xc50   :  { %3531 = vmatpush3.msra.mxu0 %v4426_v17  ;;  %v2170_v17 = vld [vmem:[#allocation20 + $0x48] sm:$0xff] }
 0xc51   :  { %3532 = vmatprep.subr.mxu0 %v3861_v56 }
 0xc52   :  { %3533 = vmatpush3.msra.mxu0 %v4430_v20  ;;  %v2169_v20 = vld [vmem:[#allocation20 + $0x40] sm:$0xff] }
 0xc53   :  { %3534 = vmatprep.subr.mxu0 %v3861_v56 }
 0xc54   :  { %3535 = vmatpush3.msra.mxu0 %v4434_v22  ;;  %v2168_v22 = vld [vmem:[#allocation20 + $0x38] sm:$0xff] }
 0xc55   :  { %3536 = vmatprep.subr.mxu0 %v3861_v56 }
 0xc56   :  { %3537 = vmatpush3.msra.mxu0 %v4438_v34  ;;  %v2167_v34 = vld [vmem:[#allocation20 + $0x30] sm:$0xff] }
 0xc57   :  { %3538 = vmatprep.subr.mxu0 %v3861_v56 }
 0xc58   :  { %3539 = vmatpush3.msra.mxu0 %v4442_v36  ;;  %v2166_v36 = vld [vmem:[#allocation20 + $0x28] sm:$0xff] }
 0xc59   :  { %3540 = vmatprep.subr.mxu0 %v3861_v56 }
 0xc5a   :  { %3541 = vmatpush3.msra.mxu0 %v4446_v37  ;;  %v2165_v37 = vld [vmem:[#allocation20 + $0x20] sm:$0xff] }
 0xc5b   :  { %3580 = vmatprep.subr.mxu0 %v3861_v56 }
 0xcfb   :  { %v1985_v2 = vpop.f32.mrf.mxu0 }
 0xcfc   :  { %v1989_v3 = vadd.f32 %v1985_v2, %v4539_v43 }
 0xcfd   :  { %v3474_v4 = vpop.f32.mrf.mxu0 }
 0xcfe   :  { %3654 = vtanh.f32 %v1989_v3 }
 0xd0b   :  { %v3655_v7 = vpop.eup %3654 }
 0xd0c   :  { %3508 = vmatmul.mubr.f32.vlgmr.msra.gmra.mxu1 %v3655_v7 }
 0xd0d   :  { %3546 = vmatpush3.msra.mxu1 %v2176_v6  ;;  %3577 = vmatprep.mubr.msk.f32.mxu1 %vm3862_vm0, %v3861_v56 }
 0xd0e   :  { %3547 = vmatprep.subr.mxu1 %v3861_v56 }
 0xd0f   :  { %3548 = vmatpush3.msra.mxu1 %v2175_v9 }
 0xd10   :  { %3549 = vmatprep.subr.mxu1 %v3861_v56 }
 0xd11   :  { %3550 = vmatpush3.msra.mxu1 %v2174_v11 }
 0xd12   :  { %3551 = vmatprep.subr.mxu1 %v3861_v56 }
 0xd13   :  { %3552 = vmatpush3.msra.mxu1 %v2173_v12 }
 0xd14   :  { %3553 = vmatprep.subr.mxu1 %v3861_v56 }
 0xd15   :  { %3554 = vmatpush3.msra.mxu1 %v2172_v15 }
 0xd16   :  { %3555 = vmatprep.subr.mxu1 %v3861_v56 }
 0xd17   :  { %3556 = vmatpush3.msra.mxu1 %v2171_v16 }
 0xd18   :  { %3557 = vmatprep.subr.mxu1 %v3861_v56 }
 0xd19   :  { %3558 = vmatpush3.msra.mxu1 %v2170_v17 }
 0xd1a   :  { %3559 = vmatprep.subr.mxu1 %v3861_v56 }
 0xd1b   :  { %3560 = vmatpush3.msra.mxu1 %v2169_v20 }
 0xd1c   :  { %3561 = vmatprep.subr.mxu1 %v3861_v56 }
 0xd1d   :  { %3562 = vmatpush3.msra.mxu1 %v2168_v22 }
 0xd1e   :  { %3563 = vmatprep.subr.mxu1 %v3861_v56 }
 0xd1f   :  { %3564 = vmatpush3.msra.mxu1 %v2167_v34 }
 0xd20   :  { %3565 = vmatprep.subr.mxu1 %v3861_v56 }
 0xd21   :  { %3566 = vmatpush3.msra.mxu1 %v2166_v36 }
 0xd22   :  { %3567 = vmatprep.subr.mxu1 %v3861_v56 }
 0xd23   :  { %3568 = vmatpush3.msra.mxu1 %v2165_v37 }
 0xd24   :  { %3569 = vmatprep.subr.mxu1 %v3861_v56 }
 0xd25   :  { %3570 = vmatpush3.msra.mxu1 %v2164_v18 }
 0xd26   :  { %3571 = vmatprep.subr.mxu1 %v3861_v56 }
 0xd27   :  { %3572 = vmatpush3.msra.mxu1 %v2163_v21 }
 0xd28   :  { %3573 = vmatprep.subr.mxu1 %v3861_v56 }
 0xd29   :  { %3574 = vmatpush3.msra.mxu1 %v2162_v23 }
 0xd2a   :  { %3575 = vmatprep.subr.mxu1 %v3861_v56 }
 0xd2b   :  { %3576 = vmatpush3.msra.mxu1 %v2161_v24 }
 0xd2c   :  { %3578 = vmatmul.mubr.f32.vlgmr.msra.gmra.mxu1 %v4547_v58 }
 0xdcc   :  { %v2060_v25 = vpop.f32.mrf.mxu1 }
 0xdcd   :  { %v2064_v26 = vadd.f32 %v2060_v25, %v4545_v51  ;;  %v2147_v51 = vld [vmem:[#allocation18 + $0x10] sm:$0xff] }
 0xdce   :  { %v3509_v27 = vpop.f32.mrf.mxu1 }
 0xdcf   :  { %3656 = vtanh.f32 %v2064_v26 }
 0xddc   :  { %v3657_v29 = vpop.eup %3656 }
 0xddd   :  { %3543 = vmatmul.mubr.f32.vlgmr.msra.gmra.mxu0 %v3657_v29 }
 0xdde   :  { %3581 = vmatpush3.msra.mxu0 %v2160_v28  ;;  %3612 = vmatprep.mubr.msk.f32.mxu0 %vm3862_vm0, %v3861_v56 }
 0xddf   :  { %3582 = vmatprep.subr.mxu0 %v3861_v56 }
 0xde0   :  { %3583 = vmatpush3.msra.mxu0 %v2159_v30 }
 0xde1   :  { %3584 = vmatprep.subr.mxu0 %v3861_v56 }
 0xde2   :  { %3585 = vmatpush3.msra.mxu0 %v2158_v31 }
 0xde3   :  { %3586 = vmatprep.subr.mxu0 %v3861_v56 }
 0xde4   :  { %3587 = vmatpush3.msra.mxu0 %v2157_v32 }
 0xde5   :  { %3588 = vmatprep.subr.mxu0 %v3861_v56 }
 0xde6   :  { %3589 = vmatpush3.msra.mxu0 %v2156_v33 }
 0xde7   :  { %3590 = vmatprep.subr.mxu0 %v3861_v56 }
 0xde8   :  { %3591 = vmatpush3.msra.mxu0 %v2155_v40 }
 0xde9   :  { %3592 = vmatprep.subr.mxu0 %v3861_v56 }
 0xdea   :  { %3593 = vmatpush3.msra.mxu0 %v2154_v41 }
 0xdeb   :  { %3594 = vmatprep.subr.mxu0 %v3861_v56 }
 0xdec   :  { %v2243_v42 = vpop.f32.mrf.mxu1  ;;  %3595 = vmatpush3.msra.mxu0 %v2153_v44 }
 0xded   :  { %3596 = vmatprep.subr.mxu0 %v3861_v56 }
 0xdee   :  { %v3579_v43 = vpop.f32.mrf.mxu1  ;;  %3597 = vmatpush3.msra.mxu0 %v2152_v45 }
 0xdef   :  { %3598 = vmatprep.subr.mxu0 %v3861_v56 }
 0xdf0   :  { %3599 = vmatpush3.msra.mxu0 %v2151_v46 }
 0xdf1   :  { %3600 = vmatprep.subr.mxu0 %v3861_v56 }
 0xdf2   :  { %3601 = vmatpush3.msra.mxu0 %v2150_v47 }
 0xdf3   :  { %3602 = vmatprep.subr.mxu0 %v3861_v56 }
 0xdf4   :  { %3603 = vmatpush3.msra.mxu0 %v2149_v48 }
 0xdf5   :  { %3604 = vmatprep.subr.mxu0 %v3861_v56 }
 0xdf6   :  { %3605 = vmatpush3.msra.mxu0 %v2148_v49 }
 0xdf7   :  { %3606 = vmatprep.subr.mxu0 %v3861_v56 }
 0xdf8   :  { %3607 = vmatpush3.msra.mxu0 %v2147_v51 }
 0xdf9   :  { %3608 = vmatprep.subr.mxu0 %v3861_v56 }
 0xdfa   :  { %3609 = vmatpush3.msra.mxu0 %v2146_v52 }
 0xdfb   :  { %3610 = vmatprep.subr.mxu0 %v3861_v56 }
 0xdfc   :  { %3611 = vmatpush3.msra.mxu0 %v2145_v53 }
 0xe9d   :  { %v2135_v54 = vpop.f32.mrf.mxu0 }
 0xe9e   :  { %v2139_v55 = vadd.f32 %v2135_v54, %v4543_v50 }
 0xe9f   :  { %v3544_v57 = vpop.f32.mrf.mxu0 }
 0xea0   :  { %3658 = vtanh.f32 %v2139_v55 }
 0xead   :  { %v3659_v58 = vpop.eup %3658 }
 0xeae   :  { %3613 = vmatmul.mubr.f32.vlgmr.msra.gmra.mxu0 %v3659_v58 }
 0xf6e   :  { %v2313_v59 = vpop.f32.mrf.mxu0 }
 0xf6f   :  { %v2314_v61 = vadd.f32 %v2313_v59, %v2243_v42 }
 0xf70   :  { %v3614_v62 = vpop.f32.mrf.mxu0 }
 0xf71   :  { %v2324_v63 = vadd.f32 %v2338_v60, %v2314_v61 }
 0xf73   :  { %2325 = vst [vmem:[%s4782_s14] sm:$0xff] %v2324_v63 }
 0xf74   :  { %2330 = vsyncpa [#allocation8], 1 }
 0xf75   :  { %2331 = vsyncpa [#allocation10], 1 }
 0xf76   :  { %2332 = vsyncpa [#allocation13], 1 }
 0xf77   :  { %2333 = vsyncpa [#allocation16], 1 }
 0xf78   :  { %2334 = vsyncpa [#allocation19], 1 }

</bundles_post_ra>
